<compile_context>
chip_gen: v7x
topology: tpu7x:2x2x1
jax: 0.10.0
libtpu: 0.0.40
codegen_flags: <defaults>
</compile_context>

<pallas_src>
import functools
import math

import jax
import jax.numpy as jnp
from jax import lax
from jax.experimental import pallas as pl
from jax.experimental.pallas import tpu as pltpu


# --------------------------------------------------------------------------
# VMEM budget (per-chip) and tile selection.
# --------------------------------------------------------------------------
_VMEM_BUDGET_CACHE = [None]


def _vmem_budget():
    """~70% of physical VMEM (leave headroom for compiler scratch)."""
    if _VMEM_BUDGET_CACHE[0] is None:
        cap = 64 * 1024 * 1024  # conservative fallback (v7x per-TC VMEM)
        try:
            info = pltpu.get_tpu_info()
            cap = int(getattr(info, "vmem_capacity_bytes", cap))
        except Exception:
            pass
        _VMEM_BUDGET_CACHE[0] = max(16 * 1024 * 1024, int(cap * 0.7))
    return _VMEM_BUDGET_CACHE[0]


# Candidates biased toward 256/512 (v6e/v7x MXU is 2x256x256); 8/128 minimum
# for (sublane, lane) legality; full-extent fallback is always legal.
_TM_CAND = (512, 256, 128, 64, 32, 16, 8)   # sublane-facing
_TN_CAND = (512, 256, 128)                  # lane-facing
_TK_CAND = (1024, 512, 256, 128)            # contraction axis
_TS_CAND = (512, 256, 128, 64, 32, 16, 8)   # sequence tiles (attention)


def _choose_tile(dim, candidates):
    for c in candidates:
        if c <= dim and dim % c == 0:
            return c
    return dim


def _round_up(x, m):
    return ((x + m - 1) // m) * m


# --------------------------------------------------------------------------
# Tiled linear: (x @ Wt + b), bf16 MXU inputs, f32 accumulator.
# Used for the final vocab projection (everything else is fused elsewhere).
# --------------------------------------------------------------------------
def _linear_kernel(x_ref, w_ref, b_ref, o_ref, acc_ref):
    k = pl.program_id(2)

    @pl.when(k == 0)
    def _():
        acc_ref[...] = jnp.zeros_like(acc_ref)

    acc_ref[...] += jnp.dot(x_ref[...].astype(jnp.bfloat16), w_ref[...],
                            preferred_element_type=jnp.float32)

    @pl.when(k == pl.num_programs(2) - 1)
    def _():
        o_ref[...] = (acc_ref[...] + b_ref[...]).astype(o_ref.dtype)


def _linear_tiles(Mp, Np, K, budget):
    tm = _choose_tile(Mp, _TM_CAND)
    tn = _choose_tile(Np, _TN_CAND)
    tk = _choose_tile(K, _TK_CAND)

    def vmem(tm, tn, tk):
        # 2-deep pipelined x(f32)/w(bf16)/bias(f32)/out(f32) + f32 accumulator.
        return (2 * (tm * tk * 4 + tk * tn * 2 + tn * 4 + tm * tn * 4)
                + tm * tn * 4)

    while vmem(tm, tn, tk) > budget:
        if tk > 128 and tk % 2 == 0:
            tk //= 2
        elif tn > 128 and tn % 2 == 0:
            tn //= 2
        elif tm > 8 and tm % 2 == 0:
            tm //= 2
        else:
            break
    return tm, tn, tk


def linear(x, wt, b):
    """x: (M, K) f32; wt: (K, N) bf16 pre-transposed; b: (N,) f32 -> (M, N) f32."""
    M, K = x.shape
    N = wt.shape[1]
    Mp = _round_up(M, 8)
    Np = _round_up(N, 128)          # lane-dense output stores (no vst.msk)
    if Mp != M:
        x = jnp.pad(x, ((0, Mp - M), (0, 0)))
    if Np != N:
        wt = jnp.pad(wt, ((0, 0), (0, Np - N)))
        b = jnp.pad(b, (0, Np - N))
    budget = _vmem_budget()
    tm, tn, tk = _linear_tiles(Mp, Np, K, budget)
    out = pl.pallas_call(
        _linear_kernel,
        out_shape=jax.ShapeDtypeStruct((Mp, Np), x.dtype),
        grid_spec=pltpu.PrefetchScalarGridSpec(
            num_scalar_prefetch=0,
            # M outermost: for the vocab head M=B*S is tiny (single M tile) so
            # the (K, vocab) weight slab is streamed exactly once.
            grid=(Mp // tm, Np // tn, K // tk),
            in_specs=[pl.BlockSpec((tm, tk), lambda i, j, k: (i, k)),
                      pl.BlockSpec((tk, tn), lambda i, j, k: (k, j)),
                      pl.BlockSpec((1, tn), lambda i, j, k: (0, j))],
            out_specs=pl.BlockSpec((tm, tn), lambda i, j, k: (i, j)),
            scratch_shapes=[pltpu.VMEM((tm, tn), jnp.float32)]),
        compiler_params=pltpu.CompilerParams(
            dimension_semantics=("parallel", "parallel", "arbitrary"),
            vmem_limit_bytes=budget),
    )(x, wt, b.reshape(1, Np))
    if Mp != M or Np != N:
        out = out[:M, :N]
    return out


# --------------------------------------------------------------------------
# Fused: (x @ Wt + b) + residual -> LayerNorm   (attention out-projection)
# --------------------------------------------------------------------------
def _linear_add_ln_kernel(x_ref, w_ref, b_ref, r_ref, g_ref, be_ref,
                          o_ref, acc_ref, *, eps):
    k = pl.program_id(1)

    @pl.when(k == 0)
    def _():
        acc_ref[...] = jnp.zeros_like(acc_ref)

    acc_ref[...] += jnp.dot(x_ref[...].astype(jnp.bfloat16), w_ref[...],
                            preferred_element_type=jnp.float32)

    @pl.when(k == pl.num_programs(1) - 1)
    def _():
        y = acc_ref[...] + b_ref[...] + r_ref[...]
        mu = jnp.mean(y, axis=-1, keepdims=True)
        yc = y - mu
        var = jnp.mean(yc * yc, axis=-1, keepdims=True)
        o_ref[...] = (yc * lax.rsqrt(var + eps) * g_ref[...]
                      + be_ref[...]).astype(o_ref.dtype)


def _ln_fused_tiles(M, K, N, budget):
    tm = _choose_tile(M, _TM_CAND)
    tk = _choose_tile(K, _TK_CAND)

    def vmem(tm, tk):
        return (2 * (tm * tk * 4 + tk * N * 2 + 3 * N * 4
                     + tm * N * 4 + tm * N * 4)
                + tm * N * 4)

    while vmem(tm, tk) > budget:
        if tk > 128 and tk % 2 == 0:
            tk //= 2
        elif tm > 8 and tm % 2 == 0:
            tm //= 2
        else:
            break
    return tm, tk


def linear_add_ln(x, wt, b, residual, gamma, beta, eps=1e-5):
    """LayerNorm((x @ wt + b) + residual). x: (M, K) f32; wt: (K, N) bf16."""
    M, K = x.shape
    N = wt.shape[1]
    budget = _vmem_budget()
    tm, tk = _ln_fused_tiles(M, K, N, budget)
    kern = functools.partial(_linear_add_ln_kernel, eps=eps)
    return pl.pallas_call(
        kern,
        out_shape=jax.ShapeDtypeStruct((M, N), x.dtype),
        grid_spec=pltpu.PrefetchScalarGridSpec(
            num_scalar_prefetch=0,
            grid=(M // tm, K // tk),
            in_specs=[pl.BlockSpec((tm, tk), lambda i, k: (i, k)),
                      pl.BlockSpec((tk, N), lambda i, k: (k, 0)),
                      pl.BlockSpec((1, N), lambda i, k: (0, 0)),
                      pl.BlockSpec((tm, N), lambda i, k: (i, 0)),
                      pl.BlockSpec((1, N), lambda i, k: (0, 0)),
                      pl.BlockSpec((1, N), lambda i, k: (0, 0))],
            out_specs=pl.BlockSpec((tm, N), lambda i, k: (i, 0)),
            scratch_shapes=[pltpu.VMEM((tm, N), jnp.float32)]),
        compiler_params=pltpu.CompilerParams(
            dimension_semantics=("parallel", "arbitrary"),
            vmem_limit_bytes=budget),
    )(x, wt, b.reshape(1, N), residual,
      gamma.reshape(1, N), beta.reshape(1, N))


# --------------------------------------------------------------------------
# Fused FFN block: ReLU(x @ W1t + b1) @ W2t + b2 + x (residual) -> LayerNorm.
# Tiled over the hidden (F) dimension with an f32 accumulator.
# --------------------------------------------------------------------------
def _ffn_add_ln_kernel(x_ref, w1_ref, b1_ref, w2_ref, b2_ref, g_ref, be_ref,
                       o_ref, acc_ref, *, eps):
    f = pl.program_id(1)

    @pl.when(f == 0)
    def _():
        acc_ref[...] = jnp.zeros_like(acc_ref)

    xb = x_ref[...].astype(jnp.bfloat16)
    h = jnp.dot(xb, w1_ref[...], preferred_element_type=jnp.float32) + b1_ref[...]
    h = jnp.maximum(h, 0.0)                                   # ReLU (f32)
    acc_ref[...] += jnp.dot(h.astype(jnp.bfloat16), w2_ref[...],
                            preferred_element_type=jnp.float32)

    @pl.when(f == pl.num_programs(1) - 1)
    def _():
        y = acc_ref[...] + b2_ref[...] + x_ref[...]           # residual = x
        mu = jnp.mean(y, axis=-1, keepdims=True)
        yc = y - mu
        var = jnp.mean(yc * yc, axis=-1, keepdims=True)
        o_ref[...] = (yc * lax.rsqrt(var + eps) * g_ref[...]
                      + be_ref[...]).astype(o_ref.dtype)


def _ffn_tiles(M, D, F, budget):
    tm = _choose_tile(M, _TM_CAND)
    tf = _choose_tile(F, _TK_CAND)

    def vmem(tm, tf):
        return (2 * (tm * D * 4 + D * tf * 2 + tf * 4 + tf * D * 2
                     + 3 * D * 4 + tm * D * 4)
                + tm * D * 4 + tm * tf * 4)   # acc + live hidden tile

    # Shrink tf first (v7x 64 MiB VMEM guidance), then tm.
    while vmem(tm, tf) > budget:
        if tf > 128 and tf % 2 == 0:
            tf //= 2
        elif tm > 8 and tm % 2 == 0:
            tm //= 2
        else:
            break
    return tm, tf


def ffn_add_ln(x, w1t, b1, w2t, b2, gamma, beta, eps=1e-5):
    """x: (M, D) f32; w1t: (D, F) bf16; w2t: (F, D) bf16."""
    M, D = x.shape
    F = w1t.shape[1]
    budget = _vmem_budget()
    tm, tf = _ffn_tiles(M, D, F, budget)
    kern = functools.partial(_ffn_add_ln_kernel, eps=eps)
    return pl.pallas_call(
        kern,
        out_shape=jax.ShapeDtypeStruct((M, D), x.dtype),
        grid_spec=pltpu.PrefetchScalarGridSpec(
            num_scalar_prefetch=0,
            grid=(M // tm, F // tf),
            in_specs=[pl.BlockSpec((tm, D), lambda i, f: (i, 0)),
                      pl.BlockSpec((D, tf), lambda i, f: (0, f)),
                      pl.BlockSpec((1, tf), lambda i, f: (0, f)),
                      pl.BlockSpec((tf, D), lambda i, f: (f, 0)),
                      pl.BlockSpec((1, D), lambda i, f: (0, 0)),
                      pl.BlockSpec((1, D), lambda i, f: (0, 0)),
                      pl.BlockSpec((1, D), lambda i, f: (0, 0))],
            out_specs=pl.BlockSpec((tm, D), lambda i, f: (i, 0)),
            scratch_shapes=[pltpu.VMEM((tm, D), jnp.float32)]),
        compiler_params=pltpu.CompilerParams(
            dimension_semantics=("parallel", "arbitrary"),
            vmem_limit_bytes=budget),
    )(x, w1t, b1.reshape(1, F), w2t, b2.reshape(1, D),
      gamma.reshape(1, D), beta.reshape(1, D))


# --------------------------------------------------------------------------
# Fused multi-head attention: Q/KV projection + flash-style online softmax.
# grid = (B, Sq tiles [parallel], Sk tiles [arbitrary/reduction]).
# Per-head results land at static lane offsets in a (tq, D) VMEM accumulator.
# --------------------------------------------------------------------------
def _attn_kernel(xq_ref, xkv_ref, wq_ref, bq_ref, wkv_ref, bkv_ref, o_ref,
                 q_scr, kv_scr, m_scr, l_scr, acc_scr,
                 *, nhead, d_model, dh, scale):
    ki = pl.program_id(2)

    @pl.when(ki == 0)
    def _():
        # Q projection once per (batch, q-tile); state init.
        q = jnp.dot(xq_ref[0].astype(jnp.bfloat16), wq_ref[...],
                    preferred_element_type=jnp.float32) + bq_ref[...]
        q_scr[...] = q.astype(jnp.bfloat16)
        m_scr[...] = jnp.full_like(m_scr, -jnp.inf)
        l_scr[...] = jnp.zeros_like(l_scr)
        acc_scr[...] = jnp.zeros_like(acc_scr)

    # Fused K/V projection for this KV tile (no (B,S,3D) HBM round trip).
    kv = jnp.dot(xkv_ref[0].astype(jnp.bfloat16), wkv_ref[...],
                 preferred_element_type=jnp.float32) + bkv_ref[...]
    kv_scr[...] = kv.astype(jnp.bfloat16)

    # Per-head online softmax.  Static lane offsets; each head's partial
    # result is stored straight into acc_scr (no concat, no simultaneously
    # live per-head outputs).  For very large nhead a head grid axis would be
    # preferable; static offsets avoid dynamic minor-dim slicing.
    # TODO(synk): no attention_mask / key-padding mask support (mask=None path).
    for h in range(nhead):
        off = h * dh
        qh = q_scr[:, off:off + dh]                                   # (tq, dh)
        kh = kv_scr[:, off:off + dh]                                  # (tk, dh)
        vh = kv_scr[:, d_model + off:d_model + off + dh]              # (tk, dh)
        s = lax.dot_general(qh, kh, (((1,), (1,)), ((), ())),
                            preferred_element_type=jnp.float32) * scale
        m_prev = m_scr[:, h:h + 1]
        l_prev = l_scr[:, h:h + 1]
        m_new = jnp.maximum(m_prev, jnp.max(s, axis=-1, keepdims=True))
        alpha = jnp.exp(m_prev - m_new)
        p = jnp.exp(s - m_new)
        l_scr[:, h:h + 1] = alpha * l_prev + jnp.sum(p, axis=-1, keepdims=True)
        m_scr[:, h:h + 1] = m_new
        pv = jnp.dot(p.astype(jnp.bfloat16), vh,
                     preferred_element_type=jnp.float32)
        acc_scr[:, off:off + dh] = alpha * acc_scr[:, off:off + dh] + pv

    @pl.when(ki == pl.num_programs(2) - 1)
    def _():
        for h in range(nhead):
            off = h * dh
            inv = pl.reciprocal(l_scr[:, h:h + 1], approx=True)
            acc_scr[:, off:off + dh] = acc_scr[:, off:off + dh] * inv
        o_ref[0] = acc_scr[...].astype(o_ref.dtype)


def _attn_tiles(Sq, Sk, D, nhead, budget):
    tq = _choose_tile(Sq, _TS_CAND)
    tk = _choose_tile(Sk, _TS_CAND)

    def vmem(tq, tk):
        return (2 * (tq * D * 4 + tk * D * 4 + D * D * 2 + D * 4
                     + D * 2 * D * 2 + 2 * D * 4 + tq * D * 4)
                + tq * D * 2 + tk * 2 * D * 2          # q / kv bf16 scratch
                + 2 * tq * max(nhead, 128) * 4         # m / l (lane-padded)
                + tq * D * 4                            # f32 accumulator
                + tq * tk * 4)                          # live score tile

    while vmem(tq, tk) > budget:
        if tk > 128 and tk % 2 == 0:
            tk //= 2
        elif tq > 8 and tq % 2 == 0:
            tq //= 2
        else:
            break
    return tq, tk


def attention(xq, xkv, wq, bq, wkv, bkv, nhead):
    """Fused (q/kv projection + MHA).  xq: (B, Sq, D); xkv: (B, Sk, D).
    wq: (D, D) bf16; wkv: (D, 2D) bf16.  Returns (B, Sq, D) in xq.dtype."""
    B, Sq, D = xq.shape
    Sk = xkv.shape[1]
    dh = D // nhead
    budget = _vmem_budget()
    tq, tk = _attn_tiles(Sq, Sk, D, nhead, budget)
    kern = functools.partial(_attn_kernel, nhead=nhead, d_model=D, dh=dh,
                             scale=1.0 / math.sqrt(dh))
    return pl.pallas_call(
        kern,
        out_shape=jax.ShapeDtypeStruct((B, Sq, D), xq.dtype),
        grid_spec=pltpu.PrefetchScalarGridSpec(
            num_scalar_prefetch=0,
            grid=(B, Sq // tq, Sk // tk),
            in_specs=[pl.BlockSpec((1, tq, D), lambda b, qi, ki: (b, qi, 0)),
                      pl.BlockSpec((1, tk, D), lambda b, qi, ki: (b, ki, 0)),
                      pl.BlockSpec((D, D), lambda b, qi, ki: (0, 0)),
                      pl.BlockSpec((1, D), lambda b, qi, ki: (0, 0)),
                      pl.BlockSpec((D, 2 * D), lambda b, qi, ki: (0, 0)),
                      pl.BlockSpec((1, 2 * D), lambda b, qi, ki: (0, 0))],
            out_specs=pl.BlockSpec((1, tq, D), lambda b, qi, ki: (b, qi, 0)),
            scratch_shapes=[pltpu.VMEM((tq, D), jnp.bfloat16),       # Q (bf16)
                            pltpu.VMEM((tk, 2 * D), jnp.bfloat16),   # K|V (bf16)
                            pltpu.VMEM((tq, nhead), jnp.float32),    # m
                            pltpu.VMEM((tq, nhead), jnp.float32),    # l
                            pltpu.VMEM((tq, D), jnp.float32)]),      # acc
        compiler_params=pltpu.CompilerParams(
            dimension_semantics=("parallel", "parallel", "arbitrary"),
            vmem_limit_bytes=budget),
    )(xq, xkv, wq, bq.reshape(1, D), wkv, bkv.reshape(1, 2 * D))


# --------------------------------------------------------------------------
# Model glue (plain JAX): reshapes / parameter plumbing only.
# --------------------------------------------------------------------------
def decoder_layer(tgt, memory, p, nhead):
    """nn.TransformerDecoderLayer, norm_first=False, eval mode (no dropout)."""
    B, S, D = tgt.shape
    tgt2 = tgt.reshape(B * S, D)

    # --- self-attention (Q/KV projection fused into the attention kernel)
    sa = attention(tgt, tgt, p["sa_q_wt"], p["sa_q_b"],
                   p["sa_kv_wt"], p["sa_kv_b"], nhead).reshape(B * S, D)
    x = linear_add_ln(sa, p["sa_out_wt"], p["sa_out_b"],
                      tgt2, p["ln1_g"], p["ln1_b"])            # (B*S, D)

    # --- cross-attention (memory == embedding output, as in Decoder.forward)
    ca = attention(x.reshape(B, S, D), memory, p["ca_q_wt"], p["ca_q_b"],
                   p["ca_kv_wt"], p["ca_kv_b"], nhead).reshape(B * S, D)
    x = linear_add_ln(ca, p["ca_out_wt"], p["ca_out_b"],
                      x, p["ln2_g"], p["ln2_b"])               # (B*S, D)

    # --- feed-forward block (matmul -> ReLU -> matmul -> add -> LN)
    x = ffn_add_ln(x, p["w1_t"], p["b1"], p["w2_t"], p["b2"],
                   p["ln3_g"], p["ln3_b"])
    return x.reshape(B, S, D)


def decoder_forward(tokens, params, nhead):
    """Equivalent of Decoder.forward(x, attention_mask=None, padding_mask=None)."""
    B, S = tokens.shape
    embd = jnp.take(params["word_embd"], tokens, axis=0)       # token gather
    x = embd + params["pos_embd"][:S, :]
    memory = x
    for p in params["layers"]:
        x = decoder_layer(x, memory, p, nhead)
    B_, S_, D = x.shape
    logits = linear(x.reshape(B_ * S_, D), params["ffw_wt"], params["ffw_b"])
    return logits.reshape(B_, S_, -1)


# --------------------------------------------------------------------------
# Deterministic parameters: matmul weights stored pre-transposed (K, N) bf16;
# biases / LN params / embeddings f32.
# --------------------------------------------------------------------------
def make_params(key, d_model, nhead, dim_ff, num_layers, vocab, max_seq):
    keys = iter(jax.random.split(key, 8 + 24 * num_layers))

    def w(shape, scale=0.05):
        return (scale * jax.random.normal(next(keys), shape)).astype(jnp.bfloat16)

    def f(shape, scale=0.05):
        return (scale * jax.random.normal(next(keys), shape)).astype(jnp.float32)

    # sinusoidal positional embedding (matches the PyTorch Embedding module)
    T = jnp.arange(max_seq, dtype=jnp.float32)
    i = jnp.arange(d_model // 2, dtype=jnp.float32)
    div = jnp.exp(2.0 * i / d_model * -jnp.log(10000.0))
    outer = jnp.outer(T, div)
    pos = jnp.zeros((max_seq, d_model), jnp.float32)
    pos = pos.at[:, ::2].set(jnp.sin(outer))
    pos = pos.at[:, 1::2].set(jnp.cos(outer))

    ones = jnp.ones((d_model,), jnp.float32)
    zeros = jnp.zeros((d_model,), jnp.float32)

    layers = []
    for _ in range(num_layers):
        layers.append(dict(
            # self-attn in-proj split into q (D->D) and fused kv (D->2D)
            sa_q_wt=w((d_model, d_model)),        sa_q_b=f((d_model,)),
            sa_kv_wt=w((d_model, 2 * d_model)),   sa_kv_b=f((2 * d_model,)),
            sa_out_wt=w((d_model, d_model)),      sa_out_b=f((d_model,)),
            # cross-attn
            ca_q_wt=w((d_model, d_model)),        ca_q_b=f((d_model,)),
            ca_kv_wt=w((d_model, 2 * d_model)),   ca_kv_b=f((2 * d_model,)),
            ca_out_wt=w((d_model, d_model)),      ca_out_b=f((d_model,)),
            # FFN
            w1_t=w((d_model, dim_ff)), b1=f((dim_ff,)),
            w2_t=w((dim_ff, d_model)), b2=f((d_model,)),
            ln1_g=ones, ln1_b=zeros,
            ln2_g=ones, ln2_b=zeros,
            ln3_g=ones, ln3_b=zeros,
        ))

    return dict(
        word_embd=f((vocab, d_model), scale=1.0),
        pos_embd=pos,
        layers=layers,
        ffw_wt=w((d_model, vocab)),
        ffw_b=f((vocab,)),
    )


# --------------------------------------------------------------------------
if __name__ == "__main__":
    d_model, nhead, dim_ff = 32, 4, 64
    num_layers, vocab, max_seq = 2, 128, 16
    B, S = 2, 8

    key = jax.random.PRNGKey(0)
    pkey, tkey = jax.random.split(key)
    params = make_params(pkey, d_model, nhead, dim_ff, num_layers, vocab, max_seq)
    tokens = jax.random.randint(tkey, (B, S), 0, vocab, dtype=jnp.int32)

    logits = decoder_forward(tokens, params, nhead)
    jax.block_until_ready(logits)
    assert logits.shape == (B, S, vocab)
    assert logits.dtype == jnp.float32
    print("KERNEL_OK")
</pallas_src>

<mosaic_0001>
module attributes {stable_mosaic.version = 11 : i64} {
  func.func @_attn_kernel(%arg0: i32, %arg1: i32, %arg2: i32, %arg3: memref<1x8x32xf32, #tpu.memory_space<vmem>>, %arg4: memref<1x8x32xf32, #tpu.memory_space<vmem>>, %arg5: memref<32x32xbf16, #tpu.memory_space<vmem>>, %arg6: memref<1x32xf32, #tpu.memory_space<vmem>>, %arg7: memref<32x64xbf16, #tpu.memory_space<vmem>>, %arg8: memref<1x64xf32, #tpu.memory_space<vmem>>, %arg9: memref<1x8x32xf32, #tpu.memory_space<vmem>>, %arg10: memref<8x32xbf16, #tpu.memory_space<vmem>>, %arg11: memref<8x64xbf16, #tpu.memory_space<vmem>>, %arg12: memref<8x4xf32, #tpu.memory_space<vmem>>, %arg13: memref<8x4xf32, #tpu.memory_space<vmem>>, %arg14: memref<8x32xf32, #tpu.memory_space<vmem>>) attributes {dimension_semantics = [#tpu.dimension_semantics<parallel>, #tpu.dimension_semantics<parallel>, #tpu.dimension_semantics<arbitrary>], iteration_bounds = array<i64: 2, 1, 1>, scalar_prefetch = 0 : i64, scratch_operands = 5 : i64, tpu.core_type = #tpu.core_type<tc>, window_params = [{transform_indices = @transform_0, window_bounds = array<i64: 1, 8, 32>}, {transform_indices = @transform_1, window_bounds = array<i64: 1, 8, 32>}, {pipeline_mode = #tpu.pipeline_mode<synchronous>, transform_indices = @transform_2, window_bounds = array<i64: 32, 32>}, {pipeline_mode = #tpu.pipeline_mode<synchronous>, transform_indices = @transform_3, window_bounds = array<i64: 1, 32>}, {pipeline_mode = #tpu.pipeline_mode<synchronous>, transform_indices = @transform_4, window_bounds = array<i64: 32, 64>}, {pipeline_mode = #tpu.pipeline_mode<synchronous>, transform_indices = @transform_5, window_bounds = array<i64: 1, 64>}, {transform_indices = @transform_6, window_bounds = array<i64: 1, 8, 32>}]} {
    %c0_i32 = arith.constant 0 : i32
    %0 = arith.cmpi eq, %arg2, %c0_i32 : i32
    %1 = arith.extui %0 : i1 to i32
    %c0_i32_0 = arith.constant 0 : i32
    %2 = arith.cmpi ne, %1, %c0_i32_0 : i32
    scf.if %2 {
      %c0_93 = arith.constant 0 : index
      %c0_94 = arith.constant 0 : index
      %c0_95 = arith.constant 0 : index
      %132 = vector.load %arg3[%c0_93, %c0_94, %c0_95] : memref<1x8x32xf32, #tpu.memory_space<vmem>>, vector<1x8x32xf32>
      %133 = vector.shape_cast %132 : vector<1x8x32xf32> to vector<8x32xf32>
      %134 = arith.truncf %133 : vector<8x32xf32> to vector<8x32xbf16>
      %c0_96 = arith.constant 0 : index
      %c0_97 = arith.constant 0 : index
      %135 = vector.load %arg5[%c0_96, %c0_97] : memref<32x32xbf16, #tpu.memory_space<vmem>>, vector<32x32xbf16>
      %cst_98 = arith.constant dense<0.000000e+00> : vector<8x32xf32>
      %136 = tpu.matmul %134, %135, %cst_98 {dimension_numbers = #tpu.dot_dimension_numbers<[1], [0], [0], [1], [0, 0, 1, 1], [], []>} : vector<8x32xbf16>, vector<32x32xbf16>, vector<8x32xf32> -> vector<8x32xf32>
      %c0_99 = arith.constant 0 : index
      %c0_100 = arith.constant 0 : index
      %137 = vector.load %arg6[%c0_99, %c0_100] : memref<1x32xf32, #tpu.memory_space<vmem>>, vector<1x32xf32>
      %138 = vector.broadcast %137 : vector<1x32xf32> to vector<8x32xf32>
      %139 = arith.addf %136, %138 : vector<8x32xf32>
      %140 = arith.truncf %139 : vector<8x32xf32> to vector<8x32xbf16>
      %c0_101 = arith.constant 0 : index
      %c0_102 = arith.constant 0 : index
      %141 = vector.load %arg10[%c0_101, %c0_102] : memref<8x32xbf16, #tpu.memory_space<vmem>>, vector<8x32xbf16>
      tpu.vector_store %arg10[%c0_101, %c0_102], %140 {strides = array<i32>} : memref<8x32xbf16, #tpu.memory_space<vmem>>, vector<8x32xbf16>,
      %cst_103 = arith.constant 0xFF800000 : f32
      %142 = vector.broadcast %cst_103 : f32 to vector<8x4xf32>
      %c0_104 = arith.constant 0 : index
      %c0_105 = arith.constant 0 : index
      %143 = vector.load %arg12[%c0_104, %c0_105] : memref<8x4xf32, #tpu.memory_space<vmem>>, vector<8x4xf32>
      tpu.vector_store %arg12[%c0_104, %c0_105], %142 {strides = array<i32>} : memref<8x4xf32, #tpu.memory_space<vmem>>, vector<8x4xf32>,
      %cst_106 = arith.constant 0.000000e+00 : f32
      %144 = vector.broadcast %cst_106 : f32 to vector<8x4xf32>
      %c0_107 = arith.constant 0 : index
      %c0_108 = arith.constant 0 : index
      %145 = vector.load %arg13[%c0_107, %c0_108] : memref<8x4xf32, #tpu.memory_space<vmem>>, vector<8x4xf32>
      tpu.vector_store %arg13[%c0_107, %c0_108], %144 {strides = array<i32>} : memref<8x4xf32, #tpu.memory_space<vmem>>, vector<8x4xf32>,
      %cst_109 = arith.constant 0.000000e+00 : f32
      %146 = vector.broadcast %cst_109 : f32 to vector<8x32xf32>
      %c0_110 = arith.constant 0 : index
      %c0_111 = arith.constant 0 : index
      %147 = vector.load %arg14[%c0_110, %c0_111] : memref<8x32xf32, #tpu.memory_space<vmem>>, vector<8x32xf32>
      tpu.vector_store %arg14[%c0_110, %c0_111], %146 {strides = array<i32>} : memref<8x32xf32, #tpu.memory_space<vmem>>, vector<8x32xf32>,
    } else {
    }
    %c0 = arith.constant 0 : index
    %c0_1 = arith.constant 0 : index
    %c0_2 = arith.constant 0 : index
    %3 = vector.load %arg4[%c0, %c0_1, %c0_2] : memref<1x8x32xf32, #tpu.memory_space<vmem>>, vector<1x8x32xf32>
    %4 = vector.shape_cast %3 : vector<1x8x32xf32> to vector<8x32xf32>
    %5 = arith.truncf %4 : vector<8x32xf32> to vector<8x32xbf16>
    %c0_3 = arith.constant 0 : index
    %c0_4 = arith.constant 0 : index
    %6 = vector.load %arg7[%c0_3, %c0_4] : memref<32x64xbf16, #tpu.memory_space<vmem>>, vector<32x64xbf16>
    %cst = arith.constant dense<0.000000e+00> : vector<8x64xf32>
    %7 = tpu.matmul %5, %6, %cst {dimension_numbers = #tpu.dot_dimension_numbers<[1], [0], [0], [1], [0, 0, 1, 1], [], []>} : vector<8x32xbf16>, vector<32x64xbf16>, vector<8x64xf32> -> vector<8x64xf32>
    %c0_5 = arith.constant 0 : index
    %c0_6 = arith.constant 0 : index
    %8 = vector.load %arg8[%c0_5, %c0_6] : memref<1x64xf32, #tpu.memory_space<vmem>>, vector<1x64xf32>
    %9 = vector.broadcast %8 : vector<1x64xf32> to vector<8x64xf32>
    %10 = arith.addf %7, %9 : vector<8x64xf32>
    %11 = arith.truncf %10 : vector<8x64xf32> to vector<8x64xbf16>
    %c0_7 = arith.constant 0 : index
    %c0_8 = arith.constant 0 : index
    %12 = vector.load %arg11[%c0_7, %c0_8] : memref<8x64xbf16, #tpu.memory_space<vmem>>, vector<8x64xbf16>
    tpu.vector_store %arg11[%c0_7, %c0_8], %11 {strides = array<i32>} : memref<8x64xbf16, #tpu.memory_space<vmem>>, vector<8x64xbf16>,
    %c0_9 = arith.constant 0 : index
    %c0_10 = arith.constant 0 : index
    %13 = vector.load %arg10[%c0_9, %c0_10] : memref<8x32xbf16, #tpu.memory_space<vmem>>, vector<8x8xbf16>
    %c0_11 = arith.constant 0 : index
    %c0_12 = arith.constant 0 : index
    %14 = vector.load %arg11[%c0_11, %c0_12] : memref<8x64xbf16, #tpu.memory_space<vmem>>, vector<8x8xbf16>
    %c0_13 = arith.constant 0 : index
    %c32 = arith.constant 32 : index
    %15 = vector.load %arg11[%c0_13, %c32] : memref<8x64xbf16, #tpu.memory_space<vmem>>, vector<8x8xbf16>
    %cst_14 = arith.constant dense<0.000000e+00> : vector<8x8xf32>
    %16 = tpu.matmul %13, %14, %cst_14 {dimension_numbers = #tpu.dot_dimension_numbers<[1], [1], [0], [0], [0, 0, 1, 0], [], []>} : vector<8x8xbf16>, vector<8x8xbf16>, vector<8x8xf32> -> vector<8x8xf32>
    %cst_15 = arith.constant 0.353553385 : f32
    %17 = vector.broadcast %cst_15 : f32 to vector<8x8xf32>
    %18 = arith.mulf %16, %17 : vector<8x8xf32>
    %c0_16 = arith.constant 0 : index
    %c0_17 = arith.constant 0 : index
    %19 = vector.load %arg12[%c0_16, %c0_17] : memref<8x4xf32, #tpu.memory_space<vmem>>, vector<8x1xf32>
    %c0_18 = arith.constant 0 : index
    %c0_19 = arith.constant 0 : index
    %20 = vector.load %arg13[%c0_18, %c0_19] : memref<8x4xf32, #tpu.memory_space<vmem>>, vector<8x1xf32>
    %cst_20 = arith.constant dense<0xFF800000> : vector<8xf32>
    %21 = vector.multi_reduction <maximumf>, %18, %cst_20 [1] : vector<8x8xf32> to vector<8xf32>
    %22 = vector.shape_cast %21 : vector<8xf32> to vector<8x1xf32>
    %23 = arith.maximumf %19, %22 : vector<8x1xf32>
    %24 = arith.subf %19, %23 : vector<8x1xf32>
    %25 = math.exp %24 : vector<8x1xf32>
    %26 = vector.broadcast %23 : vector<8x1xf32> to vector<8x8xf32>
    %27 = arith.subf %18, %26 : vector<8x8xf32>
    %28 = math.exp %27 : vector<8x8xf32>
    %29 = arith.mulf %25, %20 : vector<8x1xf32>
    %cst_21 = arith.constant dense<0.000000e+00> : vector<8xf32>
    %30 = vector.multi_reduction <add>, %28, %cst_21 [1] : vector<8x8xf32> to vector<8xf32>
    %31 = vector.shape_cast %30 : vector<8xf32> to vector<8x1xf32>
    %32 = arith.addf %29, %31 : vector<8x1xf32>
    %c0_22 = arith.constant 0 : index
    %c0_23 = arith.constant 0 : index
    %33 = vector.load %arg13[%c0_22, %c0_23] : memref<8x4xf32, #tpu.memory_space<vmem>>, vector<8x1xf32>
    tpu.vector_store %arg13[%c0_22, %c0_23], %32 {strides = array<i32>} : memref<8x4xf32, #tpu.memory_space<vmem>>, vector<8x1xf32>,
    %c0_24 = arith.constant 0 : index
    %c0_25 = arith.constant 0 : index
    %34 = vector.load %arg12[%c0_24, %c0_25] : memref<8x4xf32, #tpu.memory_space<vmem>>, vector<8x1xf32>
    tpu.vector_store %arg12[%c0_24, %c0_25], %23 {strides = array<i32>} : memref<8x4xf32, #tpu.memory_space<vmem>>, vector<8x1xf32>,
    %35 = arith.truncf %28 : vector<8x8xf32> to vector<8x8xbf16>
    %cst_26 = arith.constant dense<0.000000e+00> : vector<8x8xf32>
    %36 = tpu.matmul %35, %15, %cst_26 {dimension_numbers = #tpu.dot_dimension_numbers<[1], [0], [0], [1], [0, 0, 1, 1], [], []>} : vector<8x8xbf16>, vector<8x8xbf16>, vector<8x8xf32> -> vector<8x8xf32>
    %c0_27 = arith.constant 0 : index
    %c0_28 = arith.constant 0 : index
    %37 = vector.load %arg14[%c0_27, %c0_28] : memref<8x32xf32, #tpu.memory_space<vmem>>, vector<8x8xf32>
    %38 = vector.broadcast %25 : vector<8x1xf32> to vector<8x8xf32>
    %39 = arith.mulf %38, %37 : vector<8x8xf32>
    %40 = arith.addf %39, %36 : vector<8x8xf32>
    %c0_29 = arith.constant 0 : index
    %c0_30 = arith.constant 0 : index
    %41 = vector.load %arg14[%c0_29, %c0_30] : memref<8x32xf32, #tpu.memory_space<vmem>>, vector<8x8xf32>
    tpu.vector_store %arg14[%c0_29, %c0_30], %40 {strides = array<i32>} : memref<8x32xf32, #tpu.memory_space<vmem>>, vector<8x8xf32>,
    %c0_31 = arith.constant 0 : index
    %c8 = arith.constant 8 : index
    %42 = vector.load %arg10[%c0_31, %c8] : memref<8x32xbf16, #tpu.memory_space<vmem>>, vector<8x8xbf16>
    %c0_32 = arith.constant 0 : index
    %c8_33 = arith.constant 8 : index
    %43 = vector.load %arg11[%c0_32, %c8_33] : memref<8x64xbf16, #tpu.memory_space<vmem>>, vector<8x8xbf16>
    %c0_34 = arith.constant 0 : index
    %c40 = arith.constant 40 : index
    %44 = vector.load %arg11[%c0_34, %c40] : memref<8x64xbf16, #tpu.memory_space<vmem>>, vector<8x8xbf16>
    %cst_35 = arith.constant dense<0.000000e+00> : vector<8x8xf32>
    %45 = tpu.matmul %42, %43, %cst_35 {dimension_numbers = #tpu.dot_dimension_numbers<[1], [1], [0], [0], [0, 0, 1, 0], [], []>} : vector<8x8xbf16>, vector<8x8xbf16>, vector<8x8xf32> -> vector<8x8xf32>
    %cst_36 = arith.constant 0.353553385 : f32
    %46 = vector.broadcast %cst_36 : f32 to vector<8x8xf32>
    %47 = arith.mulf %45, %46 : vector<8x8xf32>
    %c0_37 = arith.constant 0 : index
    %c1 = arith.constant 1 : index
    %48 = vector.load %arg12[%c0_37, %c1] : memref<8x4xf32, #tpu.memory_space<vmem>>, vector<8x1xf32>
    %c0_38 = arith.constant 0 : index
    %c1_39 = arith.constant 1 : index
    %49 = vector.load %arg13[%c0_38, %c1_39] : memref<8x4xf32, #tpu.memory_space<vmem>>, vector<8x1xf32>
    %cst_40 = arith.constant dense<0xFF800000> : vector<8xf32>
    %50 = vector.multi_reduction <maximumf>, %47, %cst_40 [1] : vector<8x8xf32> to vector<8xf32>
    %51 = vector.shape_cast %50 : vector<8xf32> to vector<8x1xf32>
    %52 = arith.maximumf %48, %51 : vector<8x1xf32>
    %53 = arith.subf %48, %52 : vector<8x1xf32>
    %54 = math.exp %53 : vector<8x1xf32>
    %55 = vector.broadcast %52 : vector<8x1xf32> to vector<8x8xf32>
    %56 = arith.subf %47, %55 : vector<8x8xf32>
    %57 = math.exp %56 : vector<8x8xf32>
    %58 = arith.mulf %54, %49 : vector<8x1xf32>
    %cst_41 = arith.constant dense<0.000000e+00> : vector<8xf32>
    %59 = vector.multi_reduction <add>, %57, %cst_41 [1] : vector<8x8xf32> to vector<8xf32>
    %60 = vector.shape_cast %59 : vector<8xf32> to vector<8x1xf32>
    %61 = arith.addf %58, %60 : vector<8x1xf32>
    %c0_42 = arith.constant 0 : index
    %c1_43 = arith.constant 1 : index
    %62 = vector.load %arg13[%c0_42, %c1_43] : memref<8x4xf32, #tpu.memory_space<vmem>>, vector<8x1xf32>
    tpu.vector_store %arg13[%c0_42, %c1_43], %61 {strides = array<i32>} : memref<8x4xf32, #tpu.memory_space<vmem>>, vector<8x1xf32>,
    %c0_44 = arith.constant 0 : index
    %c1_45 = arith.constant 1 : index
    %63 = vector.load %arg12[%c0_44, %c1_45] : memref<8x4xf32, #tpu.memory_space<vmem>>, vector<8x1xf32>
    tpu.vector_store %arg12[%c0_44, %c1_45], %52 {strides = array<i32>} : memref<8x4xf32, #tpu.memory_space<vmem>>, vector<8x1xf32>,
    %64 = arith.truncf %57 : vector<8x8xf32> to vector<8x8xbf16>
    %cst_46 = arith.constant dense<0.000000e+00> : vector<8x8xf32>
    %65 = tpu.matmul %64, %44, %cst_46 {dimension_numbers = #tpu.dot_dimension_numbers<[1], [0], [0], [1], [0, 0, 1, 1], [], []>} : vector<8x8xbf16>, vector<8x8xbf16>, vector<8x8xf32> -> vector<8x8xf32>
    %c0_47 = arith.constant 0 : index
    %c8_48 = arith.constant 8 : index
    %66 = vector.load %arg14[%c0_47, %c8_48] : memref<8x32xf32, #tpu.memory_space<vmem>>, vector<8x8xf32>
    %67 = vector.broadcast %54 : vector<8x1xf32> to vector<8x8xf32>
    %68 = arith.mulf %67, %66 : vector<8x8xf32>
    %69 = arith.addf %68, %65 : vector<8x8xf32>
    %c0_49 = arith.constant 0 : index
    %c8_50 = arith.constant 8 : index
    %70 = vector.load %arg14[%c0_49, %c8_50] : memref<8x32xf32, #tpu.memory_space<vmem>>, vector<8x8xf32>
    tpu.vector_store %arg14[%c0_49, %c8_50], %69 {strides = array<i32>} : memref<8x32xf32, #tpu.memory_space<vmem>>, vector<8x8xf32>,
    %c0_51 = arith.constant 0 : index
    %c16 = arith.constant 16 : index
    %71 = vector.load %arg10[%c0_51, %c16] : memref<8x32xbf16, #tpu.memory_space<vmem>>, vector<8x8xbf16>
    %c0_52 = arith.constant 0 : index
    %c16_53 = arith.constant 16 : index
    %72 = vector.load %arg11[%c0_52, %c16_53] : memref<8x64xbf16, #tpu.memory_space<vmem>>, vector<8x8xbf16>
    %c0_54 = arith.constant 0 : index
    %c48 = arith.constant 48 : index
    %73 = vector.load %arg11[%c0_54, %c48] : memref<8x64xbf16, #tpu.memory_space<vmem>>, vector<8x8xbf16>
    %cst_55 = arith.constant dense<0.000000e+00> : vector<8x8xf32>
    %74 = tpu.matmul %71, %72, %cst_55 {dimension_numbers = #tpu.dot_dimension_numbers<[1], [1], [0], [0], [0, 0, 1, 0], [], []>} : vector<8x8xbf16>, vector<8x8xbf16>, vector<8x8xf32> -> vector<8x8xf32>
    %cst_56 = arith.constant 0.353553385 : f32
    %75 = vector.broadcast %cst_56 : f32 to vector<8x8xf32>
    %76 = arith.mulf %74, %75 : vector<8x8xf32>
    %c0_57 = arith.constant 0 : index
    %c2 = arith.constant 2 : index
    %77 = vector.load %arg12[%c0_57, %c2] : memref<8x4xf32, #tpu.memory_space<vmem>>, vector<8x1xf32>
    %c0_58 = arith.constant 0 : index
    %c2_59 = arith.constant 2 : index
    %78 = vector.load %arg13[%c0_58, %c2_59] : memref<8x4xf32, #tpu.memory_space<vmem>>, vector<8x1xf32>
    %cst_60 = arith.constant dense<0xFF800000> : vector<8xf32>
    %79 = vector.multi_reduction <maximumf>, %76, %cst_60 [1] : vector<8x8xf32> to vector<8xf32>
    %80 = vector.shape_cast %79 : vector<8xf32> to vector<8x1xf32>
    %81 = arith.maximumf %77, %80 : vector<8x1xf32>
    %82 = arith.subf %77, %81 : vector<8x1xf32>
    %83 = math.exp %82 : vector<8x1xf32>
    %84 = vector.broadcast %81 : vector<8x1xf32> to vector<8x8xf32>
    %85 = arith.subf %76, %84 : vector<8x8xf32>
    %86 = math.exp %85 : vector<8x8xf32>
    %87 = arith.mulf %83, %78 : vector<8x1xf32>
    %cst_61 = arith.constant dense<0.000000e+00> : vector<8xf32>
    %88 = vector.multi_reduction <add>, %86, %cst_61 [1] : vector<8x8xf32> to vector<8xf32>
    %89 = vector.shape_cast %88 : vector<8xf32> to vector<8x1xf32>
    %90 = arith.addf %87, %89 : vector<8x1xf32>
    %c0_62 = arith.constant 0 : index
    %c2_63 = arith.constant 2 : index
    %91 = vector.load %arg13[%c0_62, %c2_63] : memref<8x4xf32, #tpu.memory_space<vmem>>, vector<8x1xf32>
    tpu.vector_store %arg13[%c0_62, %c2_63], %90 {strides = array<i32>} : memref<8x4xf32, #tpu.memory_space<vmem>>, vector<8x1xf32>,
    %c0_64 = arith.constant 0 : index
    %c2_65 = arith.constant 2 : index
    %92 = vector.load %arg12[%c0_64, %c2_65] : memref<8x4xf32, #tpu.memory_space<vmem>>, vector<8x1xf32>
    tpu.vector_store %arg12[%c0_64, %c2_65], %81 {strides = array<i32>} : memref<8x4xf32, #tpu.memory_space<vmem>>, vector<8x1xf32>,
    %93 = arith.truncf %86 : vector<8x8xf32> to vector<8x8xbf16>
    %cst_66 = arith.constant dense<0.000000e+00> : vector<8x8xf32>
    %94 = tpu.matmul %93, %73, %cst_66 {dimension_numbers = #tpu.dot_dimension_numbers<[1], [0], [0], [1], [0, 0, 1, 1], [], []>} : vector<8x8xbf16>, vector<8x8xbf16>, vector<8x8xf32> -> vector<8x8xf32>
    %c0_67 = arith.constant 0 : index
    %c16_68 = arith.constant 16 : index
    %95 = vector.load %arg14[%c0_67, %c16_68] : memref<8x32xf32, #tpu.memory_space<vmem>>, vector<8x8xf32>
    %96 = vector.broadcast %83 : vector<8x1xf32> to vector<8x8xf32>
    %97 = arith.mulf %96, %95 : vector<8x8xf32>
    %98 = arith.addf %97, %94 : vector<8x8xf32>
    %c0_69 = arith.constant 0 : index
    %c16_70 = arith.constant 16 : index
    %99 = vector.load %arg14[%c0_69, %c16_70] : memref<8x32xf32, #tpu.memory_space<vmem>>, vector<8x8xf32>
    tpu.vector_store %arg14[%c0_69, %c16_70], %98 {strides = array<i32>} : memref<8x32xf32, #tpu.memory_space<vmem>>, vector<8x8xf32>,
    %c0_71 = arith.constant 0 : index
    %c24 = arith.constant 24 : index
    %100 = vector.load %arg10[%c0_71, %c24] : memref<8x32xbf16, #tpu.memory_space<vmem>>, vector<8x8xbf16>
    %c0_72 = arith.constant 0 : index
    %c24_73 = arith.constant 24 : index
    %101 = vector.load %arg11[%c0_72, %c24_73] : memref<8x64xbf16, #tpu.memory_space<vmem>>, vector<8x8xbf16>
    %c0_74 = arith.constant 0 : index
    %c56 = arith.constant 56 : index
    %102 = vector.load %arg11[%c0_74, %c56] : memref<8x64xbf16, #tpu.memory_space<vmem>>, vector<8x8xbf16>
    %cst_75 = arith.constant dense<0.000000e+00> : vector<8x8xf32>
    %103 = tpu.matmul %100, %101, %cst_75 {dimension_numbers = #tpu.dot_dimension_numbers<[1], [1], [0], [0], [0, 0, 1, 0], [], []>} : vector<8x8xbf16>, vector<8x8xbf16>, vector<8x8xf32> -> vector<8x8xf32>
    %cst_76 = arith.constant 0.353553385 : f32
    %104 = vector.broadcast %cst_76 : f32 to vector<8x8xf32>
    %105 = arith.mulf %103, %104 : vector<8x8xf32>
    %c0_77 = arith.constant 0 : index
    %c3 = arith.constant 3 : index
    %106 = vector.load %arg12[%c0_77, %c3] : memref<8x4xf32, #tpu.memory_space<vmem>>, vector<8x1xf32>
    %c0_78 = arith.constant 0 : index
    %c3_79 = arith.constant 3 : index
    %107 = vector.load %arg13[%c0_78, %c3_79] : memref<8x4xf32, #tpu.memory_space<vmem>>, vector<8x1xf32>
    %cst_80 = arith.constant dense<0xFF800000> : vector<8xf32>
    %108 = vector.multi_reduction <maximumf>, %105, %cst_80 [1] : vector<8x8xf32> to vector<8xf32>
    %109 = vector.shape_cast %108 : vector<8xf32> to vector<8x1xf32>
    %110 = arith.maximumf %106, %109 : vector<8x1xf32>
    %111 = arith.subf %106, %110 : vector<8x1xf32>
    %112 = math.exp %111 : vector<8x1xf32>
    %113 = vector.broadcast %110 : vector<8x1xf32> to vector<8x8xf32>
    %114 = arith.subf %105, %113 : vector<8x8xf32>
    %115 = math.exp %114 : vector<8x8xf32>
    %116 = arith.mulf %112, %107 : vector<8x1xf32>
    %cst_81 = arith.constant dense<0.000000e+00> : vector<8xf32>
    %117 = vector.multi_reduction <add>, %115, %cst_81 [1] : vector<8x8xf32> to vector<8xf32>
    %118 = vector.shape_cast %117 : vector<8xf32> to vector<8x1xf32>
    %119 = arith.addf %116, %118 : vector<8x1xf32>
    %c0_82 = arith.constant 0 : index
    %c3_83 = arith.constant 3 : index
    %120 = vector.load %arg13[%c0_82, %c3_83] : memref<8x4xf32, #tpu.memory_space<vmem>>, vector<8x1xf32>
    tpu.vector_store %arg13[%c0_82, %c3_83], %119 {strides = array<i32>} : memref<8x4xf32, #tpu.memory_space<vmem>>, vector<8x1xf32>,
    %c0_84 = arith.constant 0 : index
    %c3_85 = arith.constant 3 : index
    %121 = vector.load %arg12[%c0_84, %c3_85] : memref<8x4xf32, #tpu.memory_space<vmem>>, vector<8x1xf32>
    tpu.vector_store %arg12[%c0_84, %c3_85], %110 {strides = array<i32>} : memref<8x4xf32, #tpu.memory_space<vmem>>, vector<8x1xf32>,
    %122 = arith.truncf %115 : vector<8x8xf32> to vector<8x8xbf16>
    %cst_86 = arith.constant dense<0.000000e+00> : vector<8x8xf32>
    %123 = tpu.matmul %122, %102, %cst_86 {dimension_numbers = #tpu.dot_dimension_numbers<[1], [0], [0], [1], [0, 0, 1, 1], [], []>} : vector<8x8xbf16>, vector<8x8xbf16>, vector<8x8xf32> -> vector<8x8xf32>
    %c0_87 = arith.constant 0 : index
    %c24_88 = arith.constant 24 : index
    %124 = vector.load %arg14[%c0_87, %c24_88] : memref<8x32xf32, #tpu.memory_space<vmem>>, vector<8x8xf32>
    %125 = vector.broadcast %112 : vector<8x1xf32> to vector<8x8xf32>
    %126 = arith.mulf %125, %124 : vector<8x8xf32>
    %127 = arith.addf %126, %123 : vector<8x8xf32>
    %c0_89 = arith.constant 0 : index
    %c24_90 = arith.constant 24 : index
    %128 = vector.load %arg14[%c0_89, %c24_90] : memref<8x32xf32, #tpu.memory_space<vmem>>, vector<8x8xf32>
    tpu.vector_store %arg14[%c0_89, %c24_90], %127 {strides = array<i32>} : memref<8x32xf32, #tpu.memory_space<vmem>>, vector<8x8xf32>,
    %c0_i32_91 = arith.constant 0 : i32
    %129 = arith.cmpi eq, %arg2, %c0_i32_91 : i32
    %130 = arith.extui %129 : i1 to i32
    %c0_i32_92 = arith.constant 0 : i32
    %131 = arith.cmpi ne, %130, %c0_i32_92 : i32
    scf.if %131 {
      %c0_93 = arith.constant 0 : index
      %c0_94 = arith.constant 0 : index
      %132 = vector.load %arg13[%c0_93, %c0_94] : memref<8x4xf32, #tpu.memory_space<vmem>>, vector<8x1xf32>
      %133 = tpu.reciprocal %132 {approx = true} : vector<8x1xf32> -> vector<8x1xf32>
      %c0_95 = arith.constant 0 : index
      %c0_96 = arith.constant 0 : index
      %134 = vector.load %arg14[%c0_95, %c0_96] : memref<8x32xf32, #tpu.memory_space<vmem>>, vector<8x8xf32>
      %135 = vector.broadcast %133 : vector<8x1xf32> to vector<8x8xf32>
      %136 = arith.mulf %134, %135 : vector<8x8xf32>
      %c0_97 = arith.constant 0 : index
      %c0_98 = arith.constant 0 : index
      %137 = vector.load %arg14[%c0_97, %c0_98] : memref<8x32xf32, #tpu.memory_space<vmem>>, vector<8x8xf32>
      tpu.vector_store %arg14[%c0_97, %c0_98], %136 {strides = array<i32>} : memref<8x32xf32, #tpu.memory_space<vmem>>, vector<8x8xf32>,
      %c0_99 = arith.constant 0 : index
      %c1_100 = arith.constant 1 : index
      %138 = vector.load %arg13[%c0_99, %c1_100] : memref<8x4xf32, #tpu.memory_space<vmem>>, vector<8x1xf32>
      %139 = tpu.reciprocal %138 {approx = true} : vector<8x1xf32> -> vector<8x1xf32>
      %c0_101 = arith.constant 0 : index
      %c8_102 = arith.constant 8 : index
      %140 = vector.load %arg14[%c0_101, %c8_102] : memref<8x32xf32, #tpu.memory_space<vmem>>, vector<8x8xf32>
      %141 = vector.broadcast %139 : vector<8x1xf32> to vector<8x8xf32>
      %142 = arith.mulf %140, %141 : vector<8x8xf32>
      %c0_103 = arith.constant 0 : index
      %c8_104 = arith.constant 8 : index
      %143 = vector.load %arg14[%c0_103, %c8_104] : memref<8x32xf32, #tpu.memory_space<vmem>>, vector<8x8xf32>
      tpu.vector_store %arg14[%c0_103, %c8_104], %142 {strides = array<i32>} : memref<8x32xf32, #tpu.memory_space<vmem>>, vector<8x8xf32>,
      %c0_105 = arith.constant 0 : index
      %c2_106 = arith.constant 2 : index
      %144 = vector.load %arg13[%c0_105, %c2_106] : memref<8x4xf32, #tpu.memory_space<vmem>>, vector<8x1xf32>
      %145 = tpu.reciprocal %144 {approx = true} : vector<8x1xf32> -> vector<8x1xf32>
      %c0_107 = arith.constant 0 : index
      %c16_108 = arith.constant 16 : index
      %146 = vector.load %arg14[%c0_107, %c16_108] : memref<8x32xf32, #tpu.memory_space<vmem>>, vector<8x8xf32>
      %147 = vector.broadcast %145 : vector<8x1xf32> to vector<8x8xf32>
      %148 = arith.mulf %146, %147 : vector<8x8xf32>
      %c0_109 = arith.constant 0 : index
      %c16_110 = arith.constant 16 : index
      %149 = vector.load %arg14[%c0_109, %c16_110] : memref<8x32xf32, #tpu.memory_space<vmem>>, vector<8x8xf32>
      tpu.vector_store %arg14[%c0_109, %c16_110], %148 {strides = array<i32>} : memref<8x32xf32, #tpu.memory_space<vmem>>, vector<8x8xf32>,
      %c0_111 = arith.constant 0 : index
      %c3_112 = arith.constant 3 : index
      %150 = vector.load %arg13[%c0_111, %c3_112] : memref<8x4xf32, #tpu.memory_space<vmem>>, vector<8x1xf32>
      %151 = tpu.reciprocal %150 {approx = true} : vector<8x1xf32> -> vector<8x1xf32>
      %c0_113 = arith.constant 0 : index
      %c24_114 = arith.constant 24 : index
      %152 = vector.load %arg14[%c0_113, %c24_114] : memref<8x32xf32, #tpu.memory_space<vmem>>, vector<8x8xf32>
      %153 = vector.broadcast %151 : vector<8x1xf32> to vector<8x8xf32>
      %154 = arith.mulf %152, %153 : vector<8x8xf32>
      %c0_115 = arith.constant 0 : index
      %c24_116 = arith.constant 24 : index
      %155 = vector.load %arg14[%c0_115, %c24_116] : memref<8x32xf32, #tpu.memory_space<vmem>>, vector<8x8xf32>
      tpu.vector_store %arg14[%c0_115, %c24_116], %154 {strides = array<i32>} : memref<8x32xf32, #tpu.memory_space<vmem>>, vector<8x8xf32>,
      %c0_117 = arith.constant 0 : index
      %c0_118 = arith.constant 0 : index
      %156 = vector.load %arg14[%c0_117, %c0_118] : memref<8x32xf32, #tpu.memory_space<vmem>>, vector<8x32xf32>
      %c0_119 = arith.constant 0 : index
      %c0_120 = arith.constant 0 : index
      %c0_121 = arith.constant 0 : index
      %157 = vector.load %arg9[%c0_119, %c0_120, %c0_121] : memref<1x8x32xf32, #tpu.memory_space<vmem>>, vector<1x8x32xf32>
      %158 = vector.shape_cast %157 : vector<1x8x32xf32> to vector<8x32xf32>
      %159 = vector.shape_cast %156 : vector<8x32xf32> to vector<1x8x32xf32>
      tpu.vector_store %arg9[%c0_119, %c0_120, %c0_121], %159 {strides = array<i32>} : memref<1x8x32xf32, #tpu.memory_space<vmem>>, vector<1x8x32xf32>,
    } else {
    }
    return
  }
  func.func @transform_0(%arg0: i32, %arg1: i32, %arg2: i32) -> (i32, i32, i32) {
    %c0_i32 = arith.constant 0 : i32
    %c0_i32_0 = arith.constant 0 : i32
    return %arg0, %arg1, %c0_i32 : i32, i32, i32
  }
  func.func @transform_1(%arg0: i32, %arg1: i32, %arg2: i32) -> (i32, i32, i32) {
    %c0_i32 = arith.constant 0 : i32
    %c0_i32_0 = arith.constant 0 : i32
    return %arg0, %arg2, %c0_i32 : i32, i32, i32
  }
  func.func @transform_2(%arg0: i32, %arg1: i32, %arg2: i32) -> (i32, i32) {
    %c0_i32 = arith.constant 0 : i32
    %c0_i32_0 = arith.constant 0 : i32
    %c0_i32_1 = arith.constant 0 : i32
    return %c0_i32, %c0_i32_0 : i32, i32
  }
  func.func @transform_3(%arg0: i32, %arg1: i32, %arg2: i32) -> (i32, i32) {
    %c0_i32 = arith.constant 0 : i32
    %c0_i32_0 = arith.constant 0 : i32
    %c0_i32_1 = arith.constant 0 : i32
    return %c0_i32, %c0_i32_0 : i32, i32
  }
  func.func @transform_4(%arg0: i32, %arg1: i32, %arg2: i32) -> (i32, i32) {
    %c0_i32 = arith.constant 0 : i32
    %c0_i32_0 = arith.constant 0 : i32
    %c0_i32_1 = arith.constant 0 : i32
    return %c0_i32, %c0_i32_0 : i32, i32
  }
  func.func @transform_5(%arg0: i32, %arg1: i32, %arg2: i32) -> (i32, i32) {
    %c0_i32 = arith.constant 0 : i32
    %c0_i32_0 = arith.constant 0 : i32
    %c0_i32_1 = arith.constant 0 : i32
    return %c0_i32, %c0_i32_0 : i32, i32
  }
  func.func @transform_6(%arg0: i32, %arg1: i32, %arg2: i32) -> (i32, i32, i32) {
    %c0_i32 = arith.constant 0 : i32
    %c0_i32_0 = arith.constant 0 : i32
    return %arg0, %arg1, %c0_i32 : i32, i32, i32
  }
}

</mosaic_0001>

<bundles_post_ra>
// kernel: tpu_custom_call.1
= control target key start
LH: loop header
LB: loop body
LE: loop exit
PB: predicated region body
PF: predicated region fallthrough
CT: control target
= control target key end

     0   :  { %s2288_s0 = inlined_call_operand.hbm [shape: f32[2,8,32], index: 0, kind: input, shape index: {}]   ;;  %s2289_s1 = inlined_call_operand.hbm [shape: f32[2,8,32], index: 1, kind: input, shape index: {}]   ;;  %s2290_s2 = inlined_call_operand.hbm [shape: bf16[32,32], index: 2, kind: input, shape index: {}]   ;;  %s2291_s3 = inlined_call_operand.vmem [shape: f32[1,32], index: 3, kind: input, shape index: {}]   ;;  %s2292_s4 = inlined_call_operand.hbm [shape: bf16[32,64], index: 4, kind: input, shape index: {}]   ;;  %s2293_s5 = inlined_call_operand.vmem [shape: f32[1,64], index: 5, kind: input, shape index: {}]   ;;  %s2294_s6 = inlined_call_operand.hbm [shape: f32[2,8,32], index: 6, kind: output, shape index: {}]  }
   0x1   :  { %2301 = sst [smem:[#allocation24_spill]] %s2290_s2 }
   0x2   :  { %2302 = sst [smem:[#allocation25_spill]] %s2292_s4 }
   0x3   :  { %11 = vsyncpa [#allocation8], 0 }
   0x4   :  { %13 = vsyncpa [#allocation8 + $0x1], 0 }
   0x5   :  { %14 = vsyncpa [#allocation11], 0 }
   0x6   :  { %16 = vsyncpa [#allocation11 + $0x1], 0 }
   0x7   :  { %17 = vsyncpa [#allocation14], 0 }
   0x8   :  { %18 = vsyncpa [#allocation9], 0 }
   0x9   :  { %20 = vsyncpa [#allocation9 + $0x1], 0  ;;  %s1824_s21 = smov 0   ;;  %s1826_s22 = smov 0  }
   0xa   :  { %s1828_s23 = smov 0   ;;  %s1830_s24 = smov 0  }
   0xb   :  { %s1832_s25 = smov 0   ;;  %s1834_s26 = smov 0  }
   0xc LB: > { %2303 = sst [smem:[#allocation21_spill]] %s1759_s25  ;;  %s1855_s27 = sadd.s32 4294967295, %s1763_s26   ;;  %s1763_s26 = sphi %s1834_s26, %s26_s26   ;;  %s1759_s25 = sphi %s1832_s25, %s2326_s25   ;;  %s1755_s24 = sphi %s1830_s24, %s2325_s24   ;;  %s1751_s23 = sphi %s1828_s23, %s2329_s23   ;;  %s1747_s22 = sphi %s1826_s22, %s2328_s22   ;;  %s1743_s21 = sphi %s1824_s21, %s2327_s21  }
   0xd   : > { %s1278_s28 = sadd.s32 4294967294, %s1763_s26   ;;  %p67_p0 = scmp.ne.s32.totalorder %s1747_s22, %s1743_s21 }
   0xe   : > { %p2295_p1 = scmp.eq.s32.totalorder %s1855_s27, 0  ;;  %p211_p3 = scmp.eq.s32.totalorder %s1278_s28, 1 }
   0xf   : > { %p1279_p5 = scmp.ge.s32.totalorder %s1763_s26, 1  ;;  %p218_p7 = scmp.lt.s32.totalorder %s1763_s26, 3 }
  0x10   : > { %p1864_p4 = por %p2295_p1, %p67_p0  ;;  %p1869_p6 = por %p211_p3, %p67_p0 }
  0x11   : > { %p1874_p8 = pnand %p1279_p5, %p218_p7  ;;  %s1765_s8 = smov [#allocation12]  }
  0x12   : > { %s2304_s29 = scalar_select %p1864_p4, 1, 0 }
  0x13   : > { %s2305_s30 = scalar_select %p1869_p6, 1, 0 }
  0x14   : > { %s2306_s7 = scalar_select %p1874_p8, 1, 0 }
  0x15   : > { %s230_s9 = sshll.u32 %s1765_s8, 4  ;;  %p1420_p9 = pneg %p1874_p8  ;;  %s1878_s9 = int_to_ptr.vmem [resolvable:$true] %s230_s9 }
  0x16   : > { %s1766_s11 = smov [#allocation13]   ;;  %s2308_s2 = sld [smem:[#allocation24_spill]] }
  0x17   : > { %p1885_p11 = pnand %p1420_p9, %p2295_p1  ;;  %s246_s12 = sshll.u32 %s1766_s11, 4  ;;  %s1889_s12 = int_to_ptr.vmem [resolvable:$true] %s246_s12 }
  0x19   : > { %p1555_p13 = pneg %p1885_p11 }
  0x1c   : > { %s1553_s15 = scalar_lea.hbm %s2308_s2, 256 }
  0x1d   : > { %p1554_p12 = scmp.ne.s32.totalorder %s2308_s2, %s1553_s15  ;;  %p1560_p5 = scmp.lt.u32.totalorder %s1553_s15, %s2308_s2 }
  0x1f   : > { %p1556_p0 = pnand %p1555_p13, %p1554_p12 }
  0x21   : > { %p1557_p3 = pneg %p1556_p0 }
  0x23   : > { %p1562_p7 = pnand %p1560_p5, %p1557_p3 }
  0x25   : > { %1565 = shalt.err (!%p1562_p7)
}
  0x26   : > { %s1566_s20 = scalar_lea.vmem %s1878_s9, 256  ;;  %p1574_p2 = scmp.lt.s32.totalorder %s1878_s9, %s1878_s9 }
  0x27   : > { %p1567_p9 = scmp.ne.s32.totalorder %s1878_s9, %s1566_s20  ;;  %p1575_p12 = scmp.lt.s32.totalorder %s1566_s20, %s1566_s20 }
  0x29   : > { %p1569_p10 = pnand %p1567_p9, %p1555_p13  ;;  %p1576_p0 = por %p1575_p12, %p1574_p2 }
  0x2b   : > { %p1570_p1 = pneg %p1569_p10 }
  0x2d   : > { %p1577_p6 = pnand %p1576_p0, %p1570_p1 }
  0x2f   : > { %1580 = shalt.err (!%p1577_p6)
}
  0x30   : > { %s1767_s28 = smov 64   ;;  %s1768_s8 = smov 4  }
  0x31   : > { %1423 = dma.hbm_to_vmem [thread:$0]  (!%p1885_p11), %s2308_s2, 256, %s1878_s9, [#allocation11], %s1767_s28, %s1767_s28, %s1768_s8  }
  0x32   : > { %s2309_s4 = sld [smem:[#allocation25_spill]] }
  0x38   : > { %s1581_s16 = scalar_lea.hbm %s2309_s4, 256 }
  0x39   : > { %p1582_p2 = scmp.ne.s32.totalorder %s2309_s4, %s1581_s16  ;;  %p1588_p10 = scmp.lt.u32.totalorder %s1581_s16, %s2309_s4 }
  0x3b   : > { %p1584_p1 = pnand %p1582_p2, %p1555_p13 }
  0x3d   : > { %p1585_p6 = pneg %p1584_p1 }
  0x3f   : > { %p1590_p3 = pnand %p1588_p10, %p1585_p6 }
  0x41   : > { %1593 = shalt.err (!%p1590_p3)
}
  0x42   : > { %s1594_s9 = scalar_lea.vmem %s1889_s12, 256  ;;  %p1602_p12 = scmp.lt.s32.totalorder %s1889_s12, %s1889_s12 }
  0x43   : > { %p1595_p5 = scmp.ne.s32.totalorder %s1889_s12, %s1594_s9  ;;  %p1603_p0 = scmp.lt.s32.totalorder %s1594_s9, %s1594_s9 }
  0x45   : > { %p1597_p7 = pnand %p1595_p5, %p1555_p13  ;;  %p1604_p2 = por %p1603_p0, %p1602_p12 }
  0x47   : > { %p1598_p9 = pneg %p1597_p7 }
  0x49   : > { %p1605_p1 = pnand %p1604_p2, %p1598_p9 }
  0x4b   : > { %1608 = shalt.err (!%p1605_p1)
}
  0x4c   : > { %1426 = dma.hbm_to_vmem [thread:$0]  (!%p1885_p11), %s2309_s4, 256, %s1889_s12, [#allocation14], %s1767_s28, %s1767_s28, %s1768_s8  }
  0x4d   : > { %s45_s14 = sadd.s32 1, %s1759_s25  ;;  %s54_s15 = sadd.s32 1, %s1751_s23 }
  0x4e   : > { %p47_p13 = scmp.ge.s32.totalorder %s45_s14, 2  ;;  %p61_p6 = scmp.ne.s32.totalorder %s1751_s23, %s1747_s22 }
  0x4f   : > { %p62_p10 = scmp.eq.s32.totalorder %s1763_s26, 0  ;;  %p1440_p3 = scmp.lt.s32.totalorder %s1763_s26, 2 }
  0x50   : > { %s2331_s14 = smov (%p47_p13, %s45_s14), 0  ;;  %p2311_p7 = scmp.eq.s32.totalorder %s1855_s27, 1 }
  0x51   : > { %2310 = sst [smem:[#allocation22_spill]] %s2331_s14  ;;  %p63_p5 = por %p62_p10, %p61_p6 }
  0x52   : > { %p1953_p9 = por %p2311_p7, %p61_p6  ;;  %s49_s16 = ssub.s32 %s1759_s25, %s2331_s14 }
  0x53   : > { %s263_s17 = sand.u32 1, %s1751_s23   ;;  %p52_p12 = scmp.eq.s32.totalorder %s49_s16, 0 }
  0x54   : > { %s2312_s10 = scalar_select %p1953_p9, 1, 0 }
  0x55   : > { %s1960_s12 = sshll.u32 %s263_s17, 3  ;;  %s1284_s28 = sshll.u32 %s1759_s25, 7 }
  0x56   : > { %s1964_s8 = scalar_select %p52_p12, %s1751_s23, %s54_s15  }
  0x57   : > { %s1969_s20 = scalar_lea.hbm %s2288_s0, %s1284_s28  ;;  %s267_s9 = scalar_lea.vmem [#allocation7], %s1960_s12 }
  0x58   : > { %2313 = sst [smem:[#allocation23_spill]] %s1964_s8  ;;  %s275_s11 = sshll.u32 %s267_s9, 4  ;;  %s1978_s11 = int_to_ptr.vmem [resolvable:$true] %s275_s11 }
  0x59   : > { %p1974_p11 = pnand %p1440_p3, %p63_p5  ;;  %s1983_s18 = scalar_lea.hbm %s2289_s1, %s1284_s28 }
  0x5a   : > { %s264_s19 = scalar_lea.sflag [#allocation8], %s263_s17  ;;  %s1609_s2 = scalar_lea.hbm %s1969_s20, 128 }
  0x5b   : > { %p1610_p0 = scmp.ne.s32.totalorder %s1969_s20, %s1609_s2  ;;  %p1611_p2 = pneg %p1974_p11 }
  0x5c   : > { %s1614_s14 = scalar_lea.hbm %s2288_s0, 256  ;;  %p1615_p6 = scmp.lt.u32.totalorder %s1969_s20, %s2288_s0 }
  0x5d   : > { %p1612_p1 = pnand %p1611_p2, %p1610_p0  ;;  %p1616_p10 = scmp.lt.u32.totalorder %s1614_s14, %s1609_s2 }
  0x5e   : > { %p1618_p5 = scmp.lt.u32.totalorder %s1609_s2, %s1969_s20 }
  0x5f   : > { %p1613_p13 = pneg %p1612_p1  ;;  %p1617_p3 = por %p1616_p10, %p1615_p6 }
  0x61   : > { %p1619_p7 = por %p1618_p5, %p1617_p3 }
  0x63   : > { %p1620_p12 = pnand %p1619_p7, %p1613_p13 }
  0x65   : > { %1623 = shalt.err (!%p1620_p12)
}
  0x66   : > { %s1624_s17 = scalar_lea.vmem %s1978_s11, 128  ;;  %s1769_s4 = smov [#allocation7]  }
  0x67   : > { %p1625_p0 = scmp.ne.s32.totalorder %s1978_s11, %s1624_s17  ;;  %s1629_s28 = sshll.u32 %s1769_s4, 4  ;;  %s1630_s28 = int_to_ptr.vmem [resolvable:$false] %s1629_s28 }
  0x68   : > { %s1631_s25 = scalar_lea.vmem %s1630_s28, 256  ;;  %p1632_p4 = scmp.lt.s32.totalorder %s1978_s11, %s1630_s28 }
  0x69   : > { %p1627_p1 = pnand %p1625_p0, %p1611_p2  ;;  %p1633_p6 = scmp.lt.s32.totalorder %s1631_s25, %s1624_s17 }
  0x6b   : > { %p1628_p9 = pneg %p1627_p1  ;;  %p1634_p10 = por %p1633_p6, %p1632_p4 }
  0x6d   : > { %p1635_p3 = pnand %p1634_p10, %p1628_p9 }
  0x6f   : > { %1638 = shalt.err (!%p1635_p3)
}
  0x70   : > { %1430 = dma.hbm_to_vmem [thread:$0]  (!%p1974_p11), %s1969_s20, 128, %s1978_s11, %s264_s19  }
  0x71   : > { %s282_s2 = sand.u32 1, %s1763_s26   ;;  %s286_s14 = scalar_lea.vmem [#allocation10], %s1960_s12 }
  0x72   : > { %s294_s8 = sshll.u32 %s286_s14, 4  ;;  %s283_s15 = scalar_lea.sflag [#allocation11], %s282_s2  ;;  %s295_s8 = int_to_ptr.vmem [resolvable:$true] %s294_s8 }
  0x73   : > { %s1639_s16 = scalar_lea.hbm %s1983_s18, 128  ;;  %s1644_s4 = scalar_lea.hbm %s2289_s1, 256 }
  0x74   : > { %p1640_p4 = scmp.ne.s32.totalorder %s1983_s18, %s1639_s16  ;;  %p1645_p5 = scmp.lt.u32.totalorder %s1983_s18, %s2289_s1 }
  0x75   : > { %p1646_p7 = scmp.lt.u32.totalorder %s1644_s4, %s1639_s16  ;;  %p1648_p0 = scmp.lt.u32.totalorder %s1639_s16, %s1983_s18 }
  0x76   : > { %p1642_p9 = pnand %p1640_p4, %p1611_p2 }
  0x77   : > { %p1647_p12 = por %p1646_p7, %p1645_p5 }
  0x78   : > { %p1643_p13 = pneg %p1642_p9 }
  0x79   : > { %p1649_p1 = por %p1648_p0, %p1647_p12 }
  0x7b   : > { %p1650_p6 = pnand %p1649_p1, %p1643_p13 }
  0x7d   : > { %1653 = shalt.err (!%p1650_p6)
}
  0x7e   : > { %s1654_s12 = scalar_lea.vmem %s295_s8, 128  ;;  %s1770_s20 = smov [#allocation10]  }
  0x7f   : > { %p1655_p10 = scmp.ne.s32.totalorder %s295_s8, %s1654_s12  ;;  %s1659_s11 = sshll.u32 %s1770_s20, 4  ;;  %s1660_s11 = int_to_ptr.vmem [resolvable:$false] %s1659_s11 }
  0x80   : > { %s1661_s19 = scalar_lea.vmem %s1660_s11, 256  ;;  %p1662_p9 = scmp.lt.s32.totalorder %s295_s8, %s1660_s11 }
  0x81   : > { %p1657_p3 = pnand %p1655_p10, %p1611_p2  ;;  %p1663_p8 = scmp.lt.s32.totalorder %s1661_s19, %s1654_s12 }
  0x83   : > { %p1658_p4 = pneg %p1657_p3  ;;  %p1664_p5 = por %p1663_p8, %p1662_p9 }
  0x85   : > { %p1665_p7 = pnand %p1664_p5, %p1658_p4 }
  0x87   : > { %1668 = shalt.err (!%p1665_p7)
}
  0x88   : > { %1433 = dma.hbm_to_vmem [thread:$0]  (!%p1974_p11), %s1983_s18, 128, %s295_s8, %s283_s15  }
  0x89   : > { %p2315_p13 = scmp.ne.s32.totalorder %s2306_s7, 0 }
  0x8a   : > { %s2034_s2 = sand.u32 (!%p2315_p13), 1, %s1747_s22   ;;  %p2316_p8 = scmp.ne.s32.totalorder (!%p2315_p13), %s2304_s29, 0 }
  0x8b   : > { %303 = sbr.rel (%p2315_p13) target bundleno = 1445 (0x5a5), region = 44  ;;  %s2037_s14 = sshll.u32 (!%p2315_p13), %s2034_s2, 3 }
  0x8c   : > { %s306_s16 = scalar_lea.sflag (!%p2315_p13), [#allocation8], %s2034_s2  ;;  %s309_s9 = scalar_lea.vmem (!%p2315_p13), [#allocation7], %s2037_s14 }
  0x92   : > { %1722 = dma.done.wait (%p2316_p8), %s306_s16, 128  }
  0x93   : > { %1724 = vsyncadd (%p2316_p8), %s306_s16, 4294967168  ;;  %s314_s7 = sand.u32 1, %s1855_s27   ;;  %s318_s18 = scalar_lea.vmem [#allocation10], %s2037_s14 }
  0x94   : > { %s315_s13 = scalar_lea.sflag [#allocation11], %s314_s7 }
  0x95   : > { %1726 = dma.done.wait (%p2316_p8), %s315_s13, 128  }
  0x96   : > { %1728 = vsyncadd (%p2316_p8), %s315_s13, 4294967168  ;;  %p2317_p11 = scmp.eq.s32.totalorder %s1855_s27, 0 }
  0x98   : > { %1730 = dma.done.wait (%p2317_p11), [#allocation11], 256   ;;  %p2318_p2 = pmov %p2317_p11 }
  0x9a   : > { %1732 = vsyncadd (%p2318_p2), [#allocation11], 4294967040  ;;  %p2319_p12 = pmov %p2318_p2 }
  0x9b   : > { %p2320_p0 = pmov %p2318_p2 }
  0x9c   : > { %1734 = dma.done.wait (%p2319_p12), [#allocation14], 256  }
  0x9d   : > { %1736 = vsyncadd (%p2320_p0), [#allocation14], 4294967040  ;;  %vm390_vm0 = vcmask 261120   ;;  %v1771_v0 = vmov 0.0   ;;  %vm1772_vm1 = vmmov 0   ;;  %v1525_v1 = vld [vmem:[#allocation13] sm:$0xff]  }
  0x9e   : > { %1350 = vmatprep.subr.bf16.mxu1 %v1771_v0  ;;  %1342 = vmatprep.subr.bf16.mxu0 %v1771_v0  ;;  %440 = vst.msk [vmem:[#allocation6] sm:$0xff] %vm390_vm0, %v1771_v0  ;;  %v1526_v2 = vld [vmem:[#allocation12] sm:$0xff]   ;;  %v1527_v3 = vld [vmem:[#allocation13 + $0x8] sm:$0xff]   ;;  %v1528_v5 = vld [vmem:[#allocation12 + $0x8] sm:$0xff]   ;;  %vm511_vm2 = vcmask 519168   ;;  %vm435_vm3 = vcmask 257024  }
  0x9f   : > { %1354 = vmatprep.mubr.msk.bf16.mxu1 %vm1772_vm1, %v1771_v0  ;;  %1346 = vmatprep.mubr.msk.bf16.mxu0 %vm1772_vm1, %v1771_v0  ;;  %v441_v4 = vld [vmem:[%s318_s18] sm:$0xff]  ;;  %v365_v6 = vld [vmem:[%s309_s9] sm:$0xff]  ;;  %vm515_vm4 = vcmask 64512   ;;  %s1773_s17 = smov 112   ;;  %s1774_s4 = smov 120   ;;  %vm437_vm5 = vcmask 31744  }
  0xa0   : > { %1351 = vmatpush3.bf16.msra.mxu1 %v1525_v1  ;;  %1343 = vmatpush3.bf16.msra.mxu0 %v1526_v2  ;;  %v442_v7 = vpack.c.bf16 %v441_v4, %v441_v4  ;;  %v366_v8 = vpack.c.bf16 %v365_v6, %v365_v6  ;;  %v1297_v9 = vld [vmem:[%s2293_s5] ss:$0 sm:$0xff]  ;;  %s1775_s28 = smov 104   ;;  %v1776_v47 = vmov -inf   ;;  %439 = vst.msk [vmem:[#allocation5] sm:$0xff] %vm437_vm5, %v1771_v0  ;;  %v1777_v48 = vmov 0  }
  0xa1   : > { %1352 = vmatprep.subr.bf16.mxu1 %v1771_v0  ;;  %1344 = vmatprep.subr.bf16.mxu0 %v1771_v0  ;;  %v1293_v10 = vld [vmem:[%s2291_s3] ss:$0 sm:$0xff]  ;;  %438 = vst.msk [vmem:[#allocation4] sm:$0xff] %vm437_vm5, %v1776_v47  ;;  %v1778_v4 = vmov 1   ;;  %vm585_vm6 = vcmask 7168   ;;  %s1779_s25 = smov 96  }
  0xa2   : > { %1513 = vset.pattern.permute.xlu1 %v1777_v48  ;;  %1514 = vset.pattern.permute.xlu0 %v1778_v4  ;;  %vm731_vm7 = vcmask 15368   ;;  %vm878_vm8 = vcmask 23568   ;;  %vm597_vm9 = vcmask 1043456   ;;  %s1781_s12 = smov 88   ;;  %vm1025_vm10 = vcmask 31768   ;;  %s1783_s20 = smov 80  }
  0xa3   : > { %s1784_s11 = smov 72   ;;  %s1785_s19 = smov 8   ;;  %vm795_vm11 = vcmask 130112   ;;  %vm942_vm12 = vcmask 195712   ;;  %vm1089_vm13 = vcmask 261312  }
  0xa4   : > { %1353 = vmatpush3.bf16.msra.mxu1 %v1527_v3  ;;  %1345 = vmatpush3.bf16.msra.mxu0 %v1528_v5  ;;  %s1786_s16 = smov 16   ;;  %s1787_s9 = smov 24  }
  0xa5   : > { %1364 = vmatprep.subr.bf16.mxu1 %v1771_v0  ;;  %1358 = vmatprep.subr.bf16.mxu0 %v1771_v0  ;;  %s1317_s7 = sshll.u32 %s1755_s24, 7  ;;  %s359_s13 = scalar_lea.vmem [#allocation15], %s2037_s14 }
  0xa6   : > { %s1151_s18 = sshll.u32 %s359_s13, 4  ;;  %s2238_s8 = scalar_lea.hbm %s2294_s6, %s1317_s7  ;;  %s2240_s18 = int_to_ptr.vmem [resolvable:$true] %s1151_s18 }
  0xa7   : > { %1355 = vmatmul.mubr.msk.bf16.vlgmr.msra.gmra.mrb[0].mxu1 %vm390_vm0, %v442_v7  ;;  %1347 = vmatmul.mubr.msk.bf16.vlgmr.msra.gmra.mrb[0].mxu0 %vm390_vm0, %v366_v8  ;;  %s1137_s15 = scalar_lea.sflag [#allocation9], %s2034_s2  ;;  %p2321_p6 = scmp.ne.s32.totalorder %s2312_s10, 0 }
  0xa8   : > { %1366 = vmatprep.mubr.msk.bf16.mxu1 %vm1772_vm1, %v1771_v0  ;;  %1360 = vmatprep.mubr.msk.bf16.mxu0 %vm1772_vm1, %v1771_v0  ;;  %v2130_v5 = vld [vmem:[#allocation4] sm:$0xff]  ;;  %s1788_s24 = smov [#allocation15]  }
  0xa9   : > { %s1673_s14 = sshll.u32 %s1788_s24, 4  ;;  %s1674_s14 = int_to_ptr.vmem [resolvable:$false] %s1673_s14 }
  0xaa   : > { %p1676_p4 = scmp.lt.s32.totalorder %s2240_s18, %s1674_s14 }
 0x17a   : > { %v504_v11 = vpop.f32.mrb[0].mxu1  ;;  %v428_v14 = vpop.f32.mrb[0].mxu0 }
 0x17b   : > { %v505_v12 = vadd.f32 %v1297_v9, %v504_v11  ;;  %v1356_v13 = vpop.f32.mrb[1].mxu1  ;;  %v429_v16 = vadd.f32 %v1293_v10, %v428_v14  ;;  %v1348_v17 = vpop.f32.mrb[1].mxu0  ;;  %v1780_v10 = vmov 2  }
 0x17c   : > { %v507_v15 = vpop.f32.mrb[2].mxu1  ;;  %v431_v20 = vpop.f32.mrb[2].mxu0 }
 0x17d   : > { %v510_v18 = vpack.c.bf16 %v505_v12, %v505_v12  ;;  %v1357_v19 = vpop.f32.mrb[3].mxu1  ;;  %v434_v21 = vpack.c.bf16 %v429_v16, %v429_v16  ;;  %v1349_v22 = vpop.f32.mrb[3].mxu0 }
 0x17f   : > { %512 = vst.msk [vmem:[#allocation3] sm:$0xf] %vm511_vm2, %v510_v18 }
 0x180   : > { %436 = vst.msk [vmem:[#allocation2] sm:$0xf] %vm435_vm3, %v434_v21 }
 0x186   : > { %v2083_v23 = vld [vmem:[#allocation3] sm:$0xf] }
 0x187   : > { %v2085_v24 = vld [vmem:[#allocation3] ss:$0 sps:$4 sm:$0xff]   ;;  %v520_v25 = vsel %vm515_vm4, %v2083_v23, 0  ;;  %v1531_v27 = vld [vmem:[#allocation2] ss:$0 sps:$4 sm:$0xff]   ;;  %v1302_v9 = vcombine.low %v2083_v23, %v2083_v23 }
 0x188   : > { %v2089_v26 = vld [vmem:[#allocation3] ss:$0 sps:$4 sm:$0xff]   ;;  %1359 = vmatpush3.bf16.xpose.msra.mxu0 %v520_v25  ;;  %807 = vrot.lane.b32.xlu1 %v2085_v24, %s1773_s17  ;;  %v1532_v28 = vld [vmem:[#allocation2] ss:$0 sps:$4 sm:$0xff]   ;;  %v1782_v25 = vmov 3  }
 0x189   : > { %660 = vrot.lane.b32.xlu0 %v2089_v26, %s1774_s4  ;;  %1370 = vmatprep.subr.bf16.mxu0 %v1771_v0  ;;  %v513_v29 = vld [vmem:[#allocation2] sm:$0xf]  ;;  %v2095_v31 = vld [vmem:[#allocation3] ss:$0 sps:$4 sm:$0xff]  }
 0x18a   : > { %v1533_v30 = vld [vmem:[#allocation2] ss:$0 sps:$4 sm:$0xff]  }
 0x18c   : > { %802 = vrot.lane.b32.xlu1 %v1531_v27, %s1773_s17  ;;  %s1669_s17 = scalar_lea.vmem %s2240_s18, 128 }
 0x18d   : > { %655 = vrot.lane.b32.xlu0 %v1532_v28, %s1774_s4  ;;  %p1670_p1 = scmp.ne.s32.totalorder %s2240_s18, %s1669_s17  ;;  %s1675_s4 = scalar_lea.vmem %s1674_s14, 256 }
 0x18e   : > { %p1677_p9 = scmp.lt.s32.totalorder %s1675_s4, %s1669_s17 }
 0x18f   : > { %1361 = vmatmul.mubr.msk.bf16.vlgmr.msra.gmra.mrb[4].mxu0 %vm515_vm4, %v513_v29  ;;  %p1671_p10 = pnand %p1670_p1, %p2321_p6 }
 0x190   : > { %949 = vrot.lane.b32.xlu1 %v1533_v30, %s1775_s28  ;;  %1372 = vmatprep.mubr.msk.bf16.mxu0 %vm1772_vm1, %v1771_v0  ;;  %p1678_p5 = por %p1677_p9, %p1676_p4 }
 0x191   : > { %954 = vrot.lane.b32.xlu0 %v2095_v31, %s1775_s28  ;;  %p1672_p3 = pneg %p1671_p10 }
 0x193   : > { %p1679_p7 = pnand %p1678_p5, %p1672_p3 }
 0x1fa   : > { %v808_v34 = vpop.permute.xlu1 %807 }
 0x1fb   : > { %v661_v32 = vpop.permute.xlu0 %660  ;;  %v813_v36 = vsel %vm515_vm4, %v808_v34, 0 }
 0x1fc   : > { %v666_v33 = vsel %vm515_vm4, %v661_v32, 0 }
 0x1fd   : > { %1371 = vmatpush3.bf16.xpose.msra.mxu0 %v666_v33 }
 0x1fe   : > { %1382 = vmatprep.subr.bf16.mxu0 %v1771_v0  ;;  %v803_v38 = vpop.permute.xlu1 %802 }
 0x1ff   : > { %v656_v35 = vpop.permute.xlu0 %655 }
 0x202   : > { %v950_v40 = vpop.permute.xlu1 %949 }
 0x203   : > { %v955_v37 = vpop.permute.xlu0 %954 }
 0x204   : > { %1373 = vmatmul.mubr.msk.bf16.vlgmr.msra.gmra.mrb[8].mxu0 %vm515_vm4, %v656_v35  ;;  %v960_v39 = vsel %vm515_vm4, %v955_v37, 0 }
 0x205   : > { %1383 = vmatpush3.bf16.xpose.msra.mxu0 %v813_v36  ;;  %1384 = vmatprep.mubr.msk.bf16.mxu0 %vm1772_vm1, %v1771_v0 }
 0x206   : > { %1394 = vmatprep.subr.bf16.mxu0 %v1771_v0 }
 0x20c   : > { %1385 = vmatmul.mubr.msk.bf16.vlgmr.msra.gmra.mrb[12].mxu0 %vm515_vm4, %v803_v38 }
 0x20d   : > { %1395 = vmatpush3.bf16.xpose.msra.mxu0 %v960_v39  ;;  %1396 = vmatprep.mubr.msk.bf16.mxu0 %vm1772_vm1, %v1771_v0 }
 0x214   : > { %1397 = vmatmul.mubr.msk.bf16.vlgmr.msra.gmra.mrb[16].mxu0 %vm515_vm4, %v950_v40 }
 0x262   : > { %v556_v41 = vpop.f32.mrb[4].mxu0 }
 0x263   : > { %v2112_v42 = vmul.f32 0.35355338, %v556_v41  ;;  %v1362_v43 = vpop.f32.mrb[5].mxu0 }
 0x264   : > { %v559_v44 = vpop.f32.mrb[6].mxu0 }
 0x265   : > { %v1363_v45 = vpop.f32.mrb[7].mxu0  ;;  %v565_v46 = vsel %vm515_vm4, %v2112_v42, -inf }
 0x266   : > { %566 = vmax.xlane.f32.xlu0 %v565_v46 }
 0x2d7   : > { %v702_v49 = vpop.f32.mrb[8].mxu0 }
 0x2d8   : > { %v2117_v50 = vmul.f32 0.35355338, %v702_v49  ;;  %v1374_v51 = vpop.f32.mrb[9].mxu0 }
 0x2d9   : > { %v705_v52 = vpop.f32.mrb[10].mxu0 }
 0x2da   : > { %v1375_v53 = vpop.f32.mrb[11].mxu0  ;;  %v711_v54 = vsel %vm515_vm4, %v2117_v50, -inf }
 0x2db   : > { %712 = vmax.xlane.f32.xlu1 %v711_v54 }
 0x2df   : > { %v849_v55 = vpop.f32.mrb[12].mxu0 }
 0x2e0   : > { %v2121_v56 = vmul.f32 0.35355338, %v849_v55  ;;  %v1386_v57 = vpop.f32.mrb[13].mxu0 }
 0x2e1   : > { %v852_v58 = vpop.f32.mrb[14].mxu0 }
 0x2e2   : > { %v1387_v59 = vpop.f32.mrb[15].mxu0  ;;  %v858_v60 = vsel %vm515_vm4, %v2121_v56, -inf }
 0x2e3   : > { %859 = vmax.xlane.f32.xlu0 %v858_v60  ;;  %v564_v60 = vld [vmem:[#allocation5] sm:$0xff] }
 0x2e7   : > { %v996_v61 = vpop.f32.mrb[16].mxu0 }
 0x2e8   : > { %v2125_v62 = vmul.f32 0.35355338, %v996_v61  ;;  %v1398_v63 = vpop.f32.mrb[17].mxu0 }
 0x2e9   : > { %v999_v1 = vpop.f32.mrb[18].mxu0 }
 0x2ea   : > { %v1399_v2 = vpop.f32.mrb[19].mxu0  ;;  %v1005_v3 = vsel %vm515_vm4, %v2125_v62, -inf }
 0x2eb   : > { %1006 = vmax.xlane.f32.xlu0 %v1005_v3 }
 0x2f3   : > { %v567_v6 = vpop.xlane.xlu0 %566 }
 0x2f4   : > { %v2133_v7 = vmax.f32 %v2130_v5, %v567_v6 }
 0x2f6   : > { %v569_v8 = vsub.f32 %v2130_v5, %v2133_v7  ;;  %587 = vst.msk [vmem:[#allocation4] sm:$0xff] %vm585_vm6, %v2133_v7  ;;  %574 = vperm.xlu1 %1513, %v2133_v7  }
 0x2f8   : > { %v570_v46 = vmul.f32 1.442695, %v569_v8 }
 0x2fa   : > { %592 = vrot.lane.b32.xlu1 %v1302_v9, %s1779_s25 }
 0x2fb   : > { %1515 = vset.pattern.permute.xlu1 %v1780_v10 }
 0x2fd   : > { %v2143_v11 = vld [vmem:[#allocation4] sm:$0xff] }
 0x368   : > { %v713_v12 = vpop.xlane.xlu1 %712 }
 0x369   : > { %v2146_v13 = vmax.f32 %v2143_v11, %v713_v12 }
 0x36b   : > { %v715_v14 = vsub.f32 %v2143_v11, %v2146_v13  ;;  %733 = vst.msk [vmem:[#allocation4] sm:$0xff] %vm731_vm7, %v2146_v13  ;;  %720 = vperm.xlu0 %1514, %v2146_v13   ;;  %v641_v11 = vld [vmem:[#allocation6] sm:$0xff] }
 0x36d   : > { %v716_v58 = vmul.f32 1.442695, %v715_v14 }
 0x36f   : > { %1517 = vset.pattern.permute.xlu0 %v1777_v48 }
 0x370   : > { %v860_v16 = vpop.xlane.xlu0 %859 }
 0x372   : > { %v2153_v15 = vld [vmem:[#allocation4] sm:$0xff] }
 0x373   : > { %v2156_v17 = vmax.f32 %v2153_v15, %v860_v16 }
 0x375   : > { %v862_v18 = vsub.f32 %v2153_v15, %v2156_v17  ;;  %880 = vst.msk [vmem:[#allocation4] sm:$0xff] %vm878_vm8, %v2156_v17  ;;  %v575_v19 = vpop.permute.xlu1 %574  ;;  %867 = vperm.xlu1 %1515, %v2156_v17  }
 0x376   : > { %v577_v20 = vsub.f32 %v2112_v42, %v575_v19 }
 0x377   : > { %v863_v5 = vmul.f32 1.442695, %v862_v18 }
 0x378   : > { %v578_v21 = vmul.f32 1.442695, %v577_v20  ;;  %v1007_v28 = vpop.xlane.xlu0 %1006 }
 0x379   : > { %v593_v22 = vpop.permute.xlu1 %592  ;;  %735 = vrot.lane.b32.xlu1 %v2089_v26, %s1781_s12 }
 0x37a   : > { %1535 = vpow2.f32 %v578_v21  ;;  %v599_v23 = vsel %vm597_vm9, %v593_v22, 0  ;;  %1516 = vset.pattern.permute.xlu1 %v1782_v25 }
 0x37b   : > { %1365 = vmatpush3.bf16.msra.mxu1 %v599_v23 }
 0x37c   : > { %v2167_v27 = vld [vmem:[#allocation4] sm:$0xff]  ;;  %1376 = vmatprep.subr.bf16.mxu1 %v1771_v0 }
 0x37d   : > { %v2171_v29 = vmax.f32 %v2167_v27, %v1007_v28 }
 0x37f   : > { %v1009_v30 = vsub.f32 %v2167_v27, %v2171_v29  ;;  %1027 = vst.msk [vmem:[#allocation4] sm:$0xff] %vm1025_vm10, %v2171_v29  ;;  %1014 = vperm.xlu1 %1516, %v2171_v29  }
 0x381   : > { %v1010_v12 = vmul.f32 1.442695, %v1009_v30 }
 0x383   : > { %882 = vrot.lane.b32.xlu1 %v2085_v24, %s1783_s20 }
 0x384   : > { %v1536_v26 = vpop.eup %1535  ;;  %1518 = vset.pattern.permute.xlu1 %v1778_v4 }
 0x385   : > { %v588_v32 = vpack.c.bf16 %v1536_v26, %v1536_v26  ;;  %v581_v33 = vsel %vm515_vm4, %v1536_v26, 0.0 }
 0x387   : > { %1367 = vmatmul.mubr.msk.bf16.vlgmr.msra.gmra.mrb[4].mxu1 %vm515_vm4, %v588_v32  ;;  %1029 = vrot.lane.b32.xlu1 %v2095_v31, %s1784_s11 }
 0x388   : > { %1378 = vmatprep.mubr.msk.bf16.mxu1 %vm1772_vm1, %v1771_v0 }
 0x3ab   : > { %582 = vadd.xlane.f32.xlu1 %v581_v33 }
 0x3ea   : > { %v721_v34 = vpop.permute.xlu0 %720 }
 0x3eb   : > { %v723_v35 = vsub.f32 %v2117_v50, %v721_v34 }
 0x3ed   : > { %v724_v36 = vmul.f32 1.442695, %v723_v35 }
 0x3ef   : > { %1537 = vpow2.f32 %v724_v36 }
 0x3f4   : > { %v868_v24 = vpop.permute.xlu1 %867 }
 0x3f5   : > { %v870_v37 = vsub.f32 %v2121_v56, %v868_v24 }
 0x3f7   : > { %v871_v38 = vmul.f32 1.442695, %v870_v37 }
 0x3f8   : > { %v736_v39 = vpop.permute.xlu1 %735 }
 0x3f9   : > { %v1538_v40 = vpop.eup %1537  ;;  %1539 = vpow2.f32 %v871_v38  ;;  %v741_v31 = vsel %vm597_vm9, %v736_v39, 0 }
 0x3fa   : > { %1377 = vmatpush3.bf16.msra.mxu1 %v741_v31  ;;  %v727_v41 = vsel %vm515_vm4, %v1538_v40, 0.0  ;;  %v734_v42 = vpack.c.bf16 %v1538_v40, %v1538_v40 }
 0x3fb   : > { %728 = vadd.xlane.f32.xlu0 %v727_v41  ;;  %1388 = vmatprep.subr.bf16.mxu1 %v1771_v0 }
 0x3fd   : > { %1379 = vmatmul.mubr.msk.bf16.vlgmr.msra.gmra.mrb[8].mxu1 %vm515_vm4, %v734_v42 }
 0x3fe   : > { %v1015_v43 = vpop.permute.xlu1 %1014  ;;  %1390 = vmatprep.mubr.msk.bf16.mxu1 %vm1772_vm1, %v1771_v0 }
 0x3ff   : > { %v1017_v44 = vsub.f32 %v2125_v62, %v1015_v43 }
 0x401   : > { %v1018_v45 = vmul.f32 1.442695, %v1017_v44 }
 0x402   : > { %v883_v47 = vpop.permute.xlu1 %882 }
 0x403   : > { %v1540_v48 = vpop.eup %1539  ;;  %1541 = vpow2.f32 %v1018_v45  ;;  %v888_v49 = vsel %vm597_vm9, %v883_v47, 0 }
 0x404   : > { %1389 = vmatpush3.bf16.msra.mxu1 %v888_v49  ;;  %v874_v50 = vsel %vm515_vm4, %v1540_v48, 0.0  ;;  %v881_v51 = vpack.c.bf16 %v1540_v48, %v1540_v48  ;;  %1543 = vpow2.f32 %v570_v46 }
 0x405   : > { %875 = vadd.xlane.f32.xlu1 %v874_v50  ;;  %1400 = vmatprep.subr.bf16.mxu1 %v1771_v0  ;;  %1545 = vpow2.f32 %v716_v58 }
 0x406   : > { %v1030_v52 = vpop.permute.xlu1 %1029  ;;  %1547 = vpow2.f32 %v863_v5 }
 0x407   : > { %v1035_v53 = vsel %vm597_vm9, %v1030_v52, 0  ;;  %1391 = vmatmul.mubr.msk.bf16.vlgmr.msra.gmra.mrb[12].mxu1 %vm515_vm4, %v881_v51  ;;  %1549 = vpow2.f32 %v1010_v12 }
 0x408   : > { %1401 = vmatpush3.bf16.msra.mxu1 %v1035_v53  ;;  %1402 = vmatprep.mubr.msk.bf16.mxu1 %vm1772_vm1, %v1771_v0 }
 0x40d   : > { %v1542_v54 = vpop.eup %1541 }
 0x40e   : > { %v1021_v55 = vsel %vm515_vm4, %v1542_v54, 0.0  ;;  %v1028_v56 = vpack.c.bf16 %v1542_v54, %v1542_v54  ;;  %v1544_v57 = vpop.eup %1543 }
 0x40f   : > { %1022 = vadd.xlane.f32.xlu1 %v1021_v55  ;;  %v1546_v59 = vpop.eup %1545  ;;  %v580_v0 = vmul.f32 %v1544_v57, %v564_v60 }
 0x410   : > { %1403 = vmatmul.mubr.msk.bf16.vlgmr.msra.gmra.mrb[16].mxu1 %vm515_vm4, %v1028_v56  ;;  %v1548_v16 = vpop.eup %1547 }
 0x411   : > { %644 = vperm.xlu0 %1517, %v1544_v57   ;;  %v1550_v18 = vpop.eup %1549 }
 0x420   : > { %786 = vperm.xlu1 %1518, %v1546_v59  }
 0x424   : > { %1519 = vset.pattern.permute.xlu1 %v1780_v10 }
 0x438   : > { %v583_v61 = vpop.xlane.xlu1 %582 }
 0x439   : > { %v584_v62 = vadd.f32 %v583_v61, %v580_v0 }
 0x43b   : > { %586 = vst.msk [vmem:[#allocation5] sm:$0xff] %vm585_vm6, %v584_v62 }
 0x442   : > { %v710_v6 = vld [vmem:[#allocation5] sm:$0xff] }
 0x443   : > { %v726_v7 = vmul.f32 %v1546_v59, %v710_v6 }
 0x45a   : > { %v635_v63 = vpop.f32.mrb[4].mxu1 }
 0x45b   : > { %v1368_v1 = vpop.f32.mrb[5].mxu1 }
 0x45c   : > { %v638_v2 = vpop.f32.mrb[6].mxu1 }
 0x45d   : > { %v1369_v3 = vpop.f32.mrb[7].mxu1 }
 0x488   : > { %v729_v8 = vpop.xlane.xlu0 %728 }
 0x489   : > { %v730_v9 = vadd.f32 %v729_v8, %v726_v7 }
 0x48b   : > { %732 = vst.msk [vmem:[#allocation5] sm:$0xff] %vm731_vm7, %v730_v9 }
 0x490   : > { %v645_v13 = vpop.permute.xlu0 %644 }
 0x491   : > { %v647_v14 = vmul.f32 %v645_v13, %v641_v11 }
 0x492   : > { %v857_v19 = vld [vmem:[#allocation5] sm:$0xff]  ;;  %v876_v15 = vpop.xlane.xlu1 %875 }
 0x493   : > { %v648_v20 = vadd.f32 %v647_v14, %v635_v63  ;;  %v873_v21 = vmul.f32 %v1548_v16, %v857_v19 }
 0x495   : > { %649 = vst.msk [vmem:[#allocation6] sm:$0xff] %vm515_vm4, %v648_v20  ;;  %v877_v17 = vadd.f32 %v876_v15, %v873_v21 }
 0x497   : > { %879 = vst.msk [vmem:[#allocation5] sm:$0xff] %vm878_vm8, %v877_v17 }
 0x49c   : > { %v1023_v28 = vpop.xlane.xlu1 %1022  ;;  %v783_v41 = vld [vmem:[#allocation6] sm:$0xff] }
 0x49e   : > { %v1004_v22 = vld [vmem:[#allocation5] sm:$0xff] }
 0x49f   : > { %v1020_v23 = vmul.f32 %v1550_v18, %v1004_v22 }
 0x4a0   : > { %v787_v31 = vpop.permute.xlu1 %786 }
 0x4a1   : > { %v1024_v26 = vadd.f32 %v1023_v28, %v1020_v23  ;;  %v789_v42 = vmul.f32 %v787_v31, %v783_v41 }
 0x4a3   : > { %1026 = vst.msk [vmem:[#allocation5] sm:$0xff] %vm1025_vm10, %v1024_v26 }
 0x4aa   : > { %v1094_v27 = vld [vmem:[#allocation5] sm:$0xff] }
 0x4ab   : > { %1551 = vrcp.f32 %v1094_v27 }
 0x4b5   : > { %v1552_v29 = vpop.eup %1551 }
 0x4b6   : > { %1099 = vperm.xlu0 %1517, %v1552_v29  }
 0x4ba   : > { %1522 = vset.pattern.permute.xlu0 %v1780_v10 }
 0x4bb   : > { %1119 = vperm.xlu0 %1522, %v1552_v29  }
 0x4bf   : > { %1524 = vset.pattern.permute.xlu0 %v1782_v25 }
 0x4d0   : > { %v777_v30 = vpop.f32.mrb[8].mxu1 }
 0x4d1   : > { %791 = vrot.lane.b32.xlu1 %v777_v30, %s1785_s19  ;;  %v1380_v32 = vpop.f32.mrb[9].mxu1 }
 0x4d2   : > { %v780_v33 = vpop.f32.mrb[10].mxu1 }
 0x4d3   : > { %v1381_v34 = vpop.f32.mrb[11].mxu1 }
 0x4d5   : > { %933 = vperm.xlu1 %1519, %v1548_v16  }
 0x4d9   : > { %1520 = vset.pattern.permute.xlu1 %v1782_v25 }
 0x4da   : > { %v924_v35 = vpop.f32.mrb[12].mxu1 }
 0x4db   : > { %938 = vrot.lane.b32.xlu1 %v924_v35, %s1786_s16  ;;  %v1392_v36 = vpop.f32.mrb[13].mxu1 }
 0x4dc   : > { %v927_v24 = vpop.f32.mrb[14].mxu1 }
 0x4dd   : > { %v1393_v37 = vpop.f32.mrb[15].mxu1 }
 0x4df   : > { %1080 = vperm.xlu1 %1520, %v1550_v18  }
 0x4e3   : > { %v1071_v10 = vpop.f32.mrb[16].mxu1  ;;  %1521 = vset.pattern.permute.xlu1 %v1778_v4 }
 0x4e4   : > { %1085 = vrot.lane.b32.xlu1 %v1071_v10, %s1787_s9  ;;  %v1404_v38 = vpop.f32.mrb[17].mxu1 }
 0x4e5   : > { %v1074_v39 = vpop.f32.mrb[18].mxu1 }
 0x4e6   : > { %v1405_v40 = vpop.f32.mrb[19].mxu1 }
 0x4e8   : > { %1109 = vperm.xlu1 %1521, %v1552_v29  }
 0x4ec   : > { %1523 = vset.pattern.permute.xlu1 %v1782_v25 }
 0x4ed   : > { %1129 = vperm.xlu1 %1523, %v1552_v29  }
 0x535   : > { %v1100_v53 = vpop.permute.xlu0 %1099 }
 0x53a   : > { %v1120_v59 = vpop.permute.xlu0 %1119 }
 0x543   : > { %v792_v43 = vpop.permute.xlu1 %791 }
 0x544   : > { %v794_v44 = vadd.f32 %v792_v43, %v789_v42 }
 0x546   : > { %796 = vst.msk [vmem:[#allocation6] sm:$0xff] %vm795_vm11, %v794_v44 }
 0x54d   : > { %v930_v46 = vld [vmem:[#allocation6] sm:$0xff] }
 0x554   : > { %v934_v45 = vpop.permute.xlu1 %933 }
 0x555   : > { %v936_v4 = vmul.f32 %v934_v45, %v930_v46 }
 0x558   : > { %v939_v47 = vpop.permute.xlu1 %938 }
 0x559   : > { %v941_v48 = vadd.f32 %v939_v47, %v936_v4 }
 0x55b   : > { %943 = vst.msk [vmem:[#allocation6] sm:$0xff] %vm942_vm12, %v941_v48 }
 0x55e   : > { %v1081_v49 = vpop.permute.xlu1 %1080 }
 0x562   : > { %v1077_v50 = vld [vmem:[#allocation6] sm:$0xff]  ;;  %v1086_v51 = vpop.permute.xlu1 %1085 }
 0x563   : > { %v1083_v25 = vmul.f32 %v1081_v49, %v1077_v50 }
 0x565   : > { %v1088_v52 = vadd.f32 %v1086_v51, %v1083_v25 }
 0x567   : > { %1090 = vst.msk [vmem:[#allocation6] sm:$0xff] %vm1089_vm13, %v1088_v52  ;;  %v1110_v56 = vpop.permute.xlu1 %1109 }
 0x56c   : > { %v1130_v61 = vpop.permute.xlu1 %1129 }
 0x56e   : > { %v1096_v54 = vld [vmem:[#allocation6] sm:$0xff] }
 0x56f   : > { %v1102_v55 = vmul.f32 %v1100_v53, %v1096_v54 }
 0x571   : > { %1103 = vst.msk [vmem:[#allocation6] sm:$0xff] %vm515_vm4, %v1102_v55 }
 0x578   : > { %v1106_v57 = vld [vmem:[#allocation6] sm:$0xff] }
 0x579   : > { %v1112_v58 = vmul.f32 %v1110_v56, %v1106_v57 }
 0x57b   : > { %1113 = vst.msk [vmem:[#allocation6] sm:$0xff] %vm795_vm11, %v1112_v58 }
 0x582   : > { %v1116_v60 = vld [vmem:[#allocation6] sm:$0xff] }
 0x583   : > { %v1122_v0 = vmul.f32 %v1120_v59, %v1116_v60 }
 0x585   : > { %1123 = vst.msk [vmem:[#allocation6] sm:$0xff] %vm942_vm12, %v1122_v0 }
 0x58c   : > { %v1126_v62 = vld [vmem:[#allocation6] sm:$0xff] }
 0x58d   : > { %v1132_v63 = vmul.f32 %v1130_v61, %v1126_v62 }
 0x58f   : > { %1133 = vst.msk [vmem:[#allocation6] sm:$0xff] %vm1089_vm13, %v1132_v63 }
 0x596   : > { %v1134_v1 = vld [vmem:[#allocation6] sm:$0xff] }
 0x597   : > { %1135 = vst.msk [vmem:[%s359_s13] sm:$0xff] %vm390_vm0, %v1134_v1 }
 0x598   : > { %1682 = shalt.err (!%p1679_p7)
}
 0x599   : > { %s1683_s2 = scalar_lea.hbm %s2238_s8, 128  ;;  %s1687_s12 = scalar_lea.hbm %s2294_s6, 256 }
 0x59a   : > { %p1684_p13 = scmp.ne.s32.totalorder %s2238_s8, %s1683_s2  ;;  %p1688_p2 = scmp.lt.u32.totalorder %s2238_s8, %s2294_s6 }
 0x59b   : > { %p1689_p12 = scmp.lt.u32.totalorder %s1687_s12, %s1683_s2  ;;  %p1691_p1 = scmp.lt.u32.totalorder %s1683_s2, %s2238_s8 }
 0x59c   : > { %p1685_p8 = pnand %p1684_p13, %p2321_p6 }
 0x59d   : > { %p1690_p0 = por %p1689_p12, %p1688_p2 }
 0x59e   : > { %p1686_p11 = pneg %p1685_p8 }
 0x59f   : > { %p1692_p10 = por %p1691_p1, %p1690_p0 }
 0x5a1   : > { %p1693_p3 = pnand %p1692_p10, %p1686_p11 }
 0x5a3   : > { %1696 = shalt.err (!%p1693_p3)
}
 0x5a4   : > { %1418 = dma.vmem_to_hbm [thread:$0]  (%p2321_p6), %s2240_s18, 128, %s2238_s8, %s1137_s15  }
 0x5a5 PF: > { %s1163_s19 = sand.u32 1, %s1743_s21   ;;  %p2322_p4 = scmp.ne.s32.totalorder %s2305_s30, 0 }
 0x5a6   : > { %p2323_p9 = scmp.ge.s32.totalorder %s1763_s26, 2  ;;  %s1164_s16 = scalar_lea.sflag [#allocation9], %s1163_s19 }
 0x5a8   : > { %p1435_p5 = pnand %p2323_p9, %p2322_p4 }
 0x5aa   : > { %1738 = dma.done.wait (!%p1435_p5), %s1164_s16, 128  }
 0x5ab   : > { %1740 = vsyncadd (!%p1435_p5), %s1164_s16, 4294967168  ;;  %s26_s26 = sadd.s32 1, %s1763_s26   ;;  %s2324_s10 = sld [smem:[#allocation23_spill]] }
 0x5ac   : > { %p23_p7 = scmp.ge.s32.totalorder %s26_s26, 4   ;;  %s2325_s24 = sld [smem:[#allocation21_spill]] }
 0x5ad   : > { %s2326_s25 = sld [smem:[#allocation22_spill]]  ;;  %s2327_s21 = smov %s1747_s22 }
 0x5ae   : > { %s2328_s22 = smov %s1751_s23  ;;  %25 = sbr.rel (!%p23_p7) target bundleno = 12 (0xc), region = 118 }
 0x5b1   : > { %s2329_s23 = smov %s2324_s10 }
 0x5b5   :  { %1169 = vsyncpa [#allocation8], 1 }
 0x5b6   :  { %1171 = vsyncpa [#allocation8 + $0x1], 1 }
 0x5b7   :  { %1172 = vsyncpa [#allocation11], 1 }
 0x5b8   :  { %1174 = vsyncpa [#allocation11 + $0x1], 1 }
 0x5b9   :  { %1175 = vsyncpa [#allocation14], 1 }
 0x5ba   :  { %1176 = vsyncpa [#allocation9], 1 }
 0x5bb   :  { %1178 = vsyncpa [#allocation9 + $0x1], 1 }

</bundles_post_ra>
